<compile_context>
chip_gen: v7x
topology: tpu7x:2x2x1
jax: 0.10.0
libtpu: 0.0.40
codegen_flags: <defaults>
</compile_context>

<pallas_src>
import jax
import jax.numpy as jnp
from jax.experimental import pallas as pl
from jax.experimental.pallas import tpu as pltpu

# Module hyper-parameters (from BasicConv2D.__init__)
N_FILTERS = 24     # out channels
FSIZE = 2          # kernel width
KH = 2             # kernel height (fixed to 2 in the module)
WINDOW = 6         # H (window_size)
N_FEATURES = 5     # in channels
FLAT = N_FILTERS * WINDOW * 1  # 144

# Padded (lane-dense) sizes used inside the kernel.
K0 = 128    # padded im2col width     (35  -> 128)
F0 = 256    # padded flattened feats  (144 -> 256)
H1 = 1024   # padded fc1 width        (1000 -> 1024)
H2 = 128    # padded fc2 width        (100 -> 128)
NO = 128    # padded output width     (1   -> 128)


def _round_up(n, m):
    return ((n + m - 1) // m) * m


def fused_kernel(x_ref, wbig_ref, bbig_ref, w1_ref, b1_ref,
                 w2_ref, b2_ref, w3_ref, b3_ref, o_ref):
    """conv(as one matmul)+relu -> fc1+relu -> fc2+relu -> fc3, all on the MXU.

    x_ref:    (TM, K0)   im2col'ed, zero-padded input rows
    wbig_ref: (K0, F0)   conv weight repacked so feat = relu(x @ wbig + bbig)
    o_ref:    (TM, NO)   lane-dense output slab; column 0 is the real output
    """
    feat = jnp.maximum(
        jnp.dot(x_ref[...], wbig_ref[...], preferred_element_type=jnp.float32)
        + bbig_ref[...], 0.0)
    h1 = jnp.maximum(
        jnp.dot(feat, w1_ref[...], preferred_element_type=jnp.float32)
        + b1_ref[...], 0.0)
    h2 = jnp.maximum(
        jnp.dot(h1, w2_ref[...], preferred_element_type=jnp.float32)
        + b2_ref[...], 0.0)
    o_ref[...] = (
        jnp.dot(h2, w3_ref[...], preferred_element_type=jnp.float32)
        + b3_ref[...])


def basic_conv2d_forward(x, params):
    wc, bc, w1, b1, w2, b2, w3, b3 = params
    B = x.shape[0]

    # ---- glue (plain JAX): im2col + weight repack, pure layout work ----
    # PyTorch padding='same' with even 2x2 kernel, stride 1: pad (top=0,bottom=1),
    # (left=0,right=1).  The W axis is 1, so the kw=1 taps only ever see the
    # zero-padded column -> the conv reduces exactly to the kw=0 taps on an
    # H-padded input.
    xp = jnp.pad(x, ((0, 0), (0, 0), (0, 1)))                 # (B, C, H+1)
    xflat = xp.reshape(B, N_FEATURES * (WINDOW + 1))          # (B, 35): idx c*(H+1)+hp

    # Wbig[c*(H+1)+hp, o*H+h] = wc[o, c, hp-h, 0] if 0 <= hp-h < KH else 0,
    # so x @ Wbig produces the conv output already flattened channel-major
    # (o*H + h), matching PyTorch's .view(-1, 144).
    wk = wc[:, :, :, 0]                                       # (CO, CI, KH)
    wsm = jnp.zeros((N_FEATURES, WINDOW + 1, N_FILTERS, WINDOW), jnp.float32)
    for kh in range(KH):
        sel = jnp.zeros((WINDOW + 1, WINDOW), jnp.float32)
        sel = sel.at[kh:kh + WINDOW, :].set(jnp.eye(WINDOW, dtype=jnp.float32))
        wsm = wsm + jnp.einsum('oc,ph->cpoh', wk[:, :, kh], sel)
    wbig = wsm.reshape(N_FEATURES * (WINDOW + 1), FLAT)       # (35, 144)
    bbig = jnp.repeat(bc, WINDOW)                             # (144,): bc[o] at o*H+h

    # ---- pad to lane/sublane-dense shapes (zeros; relu(0)=0 keeps numerics) ----
    if B <= 256:
        TM = _round_up(B, 8)
    else:
        TM = 256
    Bp = _round_up(B, TM)

    xpad = jnp.zeros((Bp, K0), jnp.float32).at[:B, :xflat.shape[1]].set(xflat)
    wbig_p = jnp.zeros((K0, F0), jnp.float32).at[:wbig.shape[0], :FLAT].set(wbig)
    bbig_p = jnp.zeros((1, F0), jnp.float32).at[0, :FLAT].set(bbig)
    w1p = jnp.zeros((F0, H1), jnp.float32).at[:FLAT, :w1.shape[1]].set(w1)
    b1p = jnp.zeros((1, H1), jnp.float32).at[0, :b1.shape[0]].set(b1)
    w2p = jnp.zeros((H1, H2), jnp.float32).at[:w2.shape[0], :w2.shape[1]].set(w2)
    b2p = jnp.zeros((1, H2), jnp.float32).at[0, :b2.shape[0]].set(b2)
    w3p = jnp.zeros((H2, NO), jnp.float32).at[:w3.shape[0], :w3.shape[1]].set(w3)
    b3p = jnp.zeros((1, NO), jnp.float32).at[0, :b3.shape[0]].set(b3)

    flops = 2 * Bp * (K0 * F0 + F0 * H1 + H1 * H2 + H2 * NO)
    bytes_acc = 4 * (Bp * K0 + K0 * F0 + F0 * H1 + H1 * H2 + H2 * NO + Bp * NO)

    # ---- single fused Pallas kernel, tiled over batch only ----
    out_pad = pl.pallas_call(
        fused_kernel,
        out_shape=jax.ShapeDtypeStruct((Bp, NO), jnp.float32),
        grid=(Bp // TM,),
        in_specs=[
            pl.BlockSpec((TM, K0), lambda i: (i, 0)),   # x tile (batch on M axis)
            pl.BlockSpec((K0, F0), lambda i: (0, 0)),   # conv weight (resident)
            pl.BlockSpec((1, F0), lambda i: (0, 0)),    # conv bias
            pl.BlockSpec((F0, H1), lambda i: (0, 0)),   # fc1 weight (resident)
            pl.BlockSpec((1, H1), lambda i: (0, 0)),    # fc1 bias
            pl.BlockSpec((H1, H2), lambda i: (0, 0)),   # fc2 weight (resident)
            pl.BlockSpec((1, H2), lambda i: (0, 0)),    # fc2 bias
            pl.BlockSpec((H2, NO), lambda i: (0, 0)),   # fc3 weight (resident)
            pl.BlockSpec((1, NO), lambda i: (0, 0)),    # fc3 bias
        ],
        out_specs=pl.BlockSpec((TM, NO), lambda i: (i, 0)),
        compiler_params=pltpu.CompilerParams(
            dimension_semantics=("parallel",)),
        cost_estimate=pl.CostEstimate(
            flops=flops, transcendentals=0, bytes_accessed=bytes_acc),
    )(xpad, wbig_p, bbig_p, w1p, b1p, w2p, b2p, w3p, b3p)

    # slice back to the real batch and the single output column
    return out_pad[:B, :1]


def ref_forward(x, params):
    """Pure-JAX reference matching PyTorch semantics (full conv incl. both kw taps)."""
    wc, bc, w1, b1, w2, b2, w3, b3 = params
    B = x.shape[0]
    x4 = x.reshape(B, N_FEATURES, WINDOW, 1)
    xp = jnp.pad(x4, ((0, 0), (0, 0), (0, 1), (0, 1)))
    out = jnp.zeros((B, N_FILTERS, WINDOW), jnp.float32)
    for kh in range(KH):
        for kw in range(FSIZE):
            out = out + jnp.einsum('oc,bch->boh',
                                   wc[:, :, kh, kw], xp[:, :, kh:kh + WINDOW, kw])
    out = jax.nn.relu(out + bc[None, :, None])
    f = out.reshape(B, FLAT)
    h1 = jax.nn.relu(f @ w1 + b1)
    h2 = jax.nn.relu(h1 @ w2 + b2)
    return h2 @ w3 + b3


def init_params(key):
    ks = jax.random.split(key, 8)
    wc = jax.random.normal(ks[0], (N_FILTERS, N_FEATURES, KH, FSIZE), jnp.float32) * 0.1
    bc = jax.random.normal(ks[1], (N_FILTERS,), jnp.float32) * 0.1
    w1 = jax.random.normal(ks[2], (FLAT, 1000), jnp.float32) * (1.0 / jnp.sqrt(FLAT))
    b1 = jax.random.normal(ks[3], (1000,), jnp.float32) * 0.01
    w2 = jax.random.normal(ks[4], (1000, 100), jnp.float32) * (1.0 / jnp.sqrt(1000.0))
    b2 = jax.random.normal(ks[5], (100,), jnp.float32) * 0.01
    w3 = jax.random.normal(ks[6], (100, 1), jnp.float32) * (1.0 / jnp.sqrt(100.0))
    b3 = jax.random.normal(ks[7], (1,), jnp.float32) * 0.01
    return (wc, bc, w1, b1, w2, b2, w3, b3)


if __name__ == "__main__":
    key = jax.random.PRNGKey(0)
    pkey, xkey = jax.random.split(key)
    params = init_params(pkey)
    B = 2
    x = jax.random.normal(xkey, (B, N_FEATURES, WINDOW), jnp.float32)  # (B, 5, 6)

    out = jax.jit(basic_conv2d_forward)(x, params)
    out = jax.block_until_ready(out)

    ref = ref_forward(x, params)
    assert out.shape == (B, 1)
    assert jnp.allclose(out, ref, atol=1e-4, rtol=1e-4), (out, ref)
    print("KERNEL_OK")
</pallas_src>

<mosaic_0001>
module attributes {stable_mosaic.version = 11 : i64} {
  func.func @fused_kernel(%arg0: i32, %arg1: memref<8x128xf32, #tpu.memory_space<vmem>>, %arg2: memref<128x256xf32, #tpu.memory_space<vmem>>, %arg3: memref<1x256xf32, #tpu.memory_space<vmem>>, %arg4: memref<256x1024xf32, #tpu.memory_space<vmem>>, %arg5: memref<1x1024xf32, #tpu.memory_space<vmem>>, %arg6: memref<1024x128xf32, #tpu.memory_space<vmem>>, %arg7: memref<1x128xf32, #tpu.memory_space<vmem>>, %arg8: memref<128x128xf32, #tpu.memory_space<vmem>>, %arg9: memref<1x128xf32, #tpu.memory_space<vmem>>, %arg10: memref<8x128xf32, #tpu.memory_space<vmem>>) attributes {dimension_semantics = [#tpu.dimension_semantics<parallel>], iteration_bounds = array<i64: 1>, scalar_prefetch = 0 : i64, scratch_operands = 0 : i64, tpu.core_type = #tpu.core_type<tc>, window_params = [{transform_indices = @transform_0, window_bounds = array<i64: 8, 128>}, {pipeline_mode = #tpu.pipeline_mode<synchronous>, transform_indices = @transform_1, window_bounds = array<i64: 128, 256>}, {pipeline_mode = #tpu.pipeline_mode<synchronous>, transform_indices = @transform_2, window_bounds = array<i64: 1, 256>}, {pipeline_mode = #tpu.pipeline_mode<synchronous>, transform_indices = @transform_3, window_bounds = array<i64: 256, 1024>}, {pipeline_mode = #tpu.pipeline_mode<synchronous>, transform_indices = @transform_4, window_bounds = array<i64: 1, 1024>}, {pipeline_mode = #tpu.pipeline_mode<synchronous>, transform_indices = @transform_5, window_bounds = array<i64: 1024, 128>}, {pipeline_mode = #tpu.pipeline_mode<synchronous>, transform_indices = @transform_6, window_bounds = array<i64: 1, 128>}, {pipeline_mode = #tpu.pipeline_mode<synchronous>, transform_indices = @transform_7, window_bounds = array<i64: 128, 128>}, {pipeline_mode = #tpu.pipeline_mode<synchronous>, transform_indices = @transform_8, window_bounds = array<i64: 1, 128>}, {transform_indices = @transform_9, window_bounds = array<i64: 8, 128>}]} {
    %c0 = arith.constant 0 : index
    %c0_0 = arith.constant 0 : index
    %0 = vector.load %arg1[%c0, %c0_0] : memref<8x128xf32, #tpu.memory_space<vmem>>, vector<8x128xf32>
    %c0_1 = arith.constant 0 : index
    %c0_2 = arith.constant 0 : index
    %1 = vector.load %arg2[%c0_1, %c0_2] : memref<128x256xf32, #tpu.memory_space<vmem>>, vector<128x256xf32>
    %cst = arith.constant dense<0.000000e+00> : vector<8x256xf32>
    %2 = tpu.matmul %0, %1, %cst {dimension_numbers = #tpu.dot_dimension_numbers<[1], [0], [0], [1], [0, 0, 1, 1], [], []>} : vector<8x128xf32>, vector<128x256xf32>, vector<8x256xf32> -> vector<8x256xf32>
    %c0_3 = arith.constant 0 : index
    %c0_4 = arith.constant 0 : index
    %3 = vector.load %arg3[%c0_3, %c0_4] : memref<1x256xf32, #tpu.memory_space<vmem>>, vector<1x256xf32>
    %4 = vector.broadcast %3 : vector<1x256xf32> to vector<8x256xf32>
    %5 = arith.addf %2, %4 : vector<8x256xf32>
    %cst_5 = arith.constant 0.000000e+00 : f32
    %6 = vector.broadcast %cst_5 : f32 to vector<8x256xf32>
    %7 = arith.maximumf %5, %6 : vector<8x256xf32>
    %c0_6 = arith.constant 0 : index
    %c0_7 = arith.constant 0 : index
    %8 = vector.load %arg4[%c0_6, %c0_7] : memref<256x1024xf32, #tpu.memory_space<vmem>>, vector<256x1024xf32>
    %cst_8 = arith.constant dense<0.000000e+00> : vector<8x1024xf32>
    %9 = tpu.matmul %7, %8, %cst_8 {dimension_numbers = #tpu.dot_dimension_numbers<[1], [0], [0], [1], [0, 0, 1, 1], [], []>} : vector<8x256xf32>, vector<256x1024xf32>, vector<8x1024xf32> -> vector<8x1024xf32>
    %c0_9 = arith.constant 0 : index
    %c0_10 = arith.constant 0 : index
    %10 = vector.load %arg5[%c0_9, %c0_10] : memref<1x1024xf32, #tpu.memory_space<vmem>>, vector<1x1024xf32>
    %11 = vector.broadcast %10 : vector<1x1024xf32> to vector<8x1024xf32>
    %12 = arith.addf %9, %11 : vector<8x1024xf32>
    %cst_11 = arith.constant 0.000000e+00 : f32
    %13 = vector.broadcast %cst_11 : f32 to vector<8x1024xf32>
    %14 = arith.maximumf %12, %13 : vector<8x1024xf32>
    %c0_12 = arith.constant 0 : index
    %c0_13 = arith.constant 0 : index
    %15 = vector.load %arg6[%c0_12, %c0_13] : memref<1024x128xf32, #tpu.memory_space<vmem>>, vector<1024x128xf32>
    %cst_14 = arith.constant dense<0.000000e+00> : vector<8x128xf32>
    %16 = tpu.matmul %14, %15, %cst_14 {dimension_numbers = #tpu.dot_dimension_numbers<[1], [0], [0], [1], [0, 0, 1, 1], [], []>} : vector<8x1024xf32>, vector<1024x128xf32>, vector<8x128xf32> -> vector<8x128xf32>
    %c0_15 = arith.constant 0 : index
    %c0_16 = arith.constant 0 : index
    %17 = vector.load %arg7[%c0_15, %c0_16] : memref<1x128xf32, #tpu.memory_space<vmem>>, vector<1x128xf32>
    %18 = vector.broadcast %17 : vector<1x128xf32> to vector<8x128xf32>
    %19 = arith.addf %16, %18 : vector<8x128xf32>
    %cst_17 = arith.constant 0.000000e+00 : f32
    %20 = vector.broadcast %cst_17 : f32 to vector<8x128xf32>
    %21 = arith.maximumf %19, %20 : vector<8x128xf32>
    %c0_18 = arith.constant 0 : index
    %c0_19 = arith.constant 0 : index
    %22 = vector.load %arg8[%c0_18, %c0_19] : memref<128x128xf32, #tpu.memory_space<vmem>>, vector<128x128xf32>
    %cst_20 = arith.constant dense<0.000000e+00> : vector<8x128xf32>
    %23 = tpu.matmul %21, %22, %cst_20 {dimension_numbers = #tpu.dot_dimension_numbers<[1], [0], [0], [1], [0, 0, 1, 1], [], []>} : vector<8x128xf32>, vector<128x128xf32>, vector<8x128xf32> -> vector<8x128xf32>
    %c0_21 = arith.constant 0 : index
    %c0_22 = arith.constant 0 : index
    %24 = vector.load %arg9[%c0_21, %c0_22] : memref<1x128xf32, #tpu.memory_space<vmem>>, vector<1x128xf32>
    %25 = vector.broadcast %24 : vector<1x128xf32> to vector<8x128xf32>
    %26 = arith.addf %23, %25 : vector<8x128xf32>
    %c0_23 = arith.constant 0 : index
    %c0_24 = arith.constant 0 : index
    %27 = vector.load %arg10[%c0_23, %c0_24] : memref<8x128xf32, #tpu.memory_space<vmem>>, vector<8x128xf32>
    tpu.vector_store %arg10[%c0_23, %c0_24], %26 {strides = array<i32>} : memref<8x128xf32, #tpu.memory_space<vmem>>, vector<8x128xf32>,
    return
  }
  func.func @transform_0(%arg0: i32) -> (i32, i32) {
    %c0_i32 = arith.constant 0 : i32
    %c0_i32_0 = arith.constant 0 : i32
    return %arg0, %c0_i32 : i32, i32
  }
  func.func @transform_1(%arg0: i32) -> (i32, i32) {
    %c0_i32 = arith.constant 0 : i32
    %c0_i32_0 = arith.constant 0 : i32
    %c0_i32_1 = arith.constant 0 : i32
    return %c0_i32, %c0_i32_0 : i32, i32
  }
  func.func @transform_2(%arg0: i32) -> (i32, i32) {
    %c0_i32 = arith.constant 0 : i32
    %c0_i32_0 = arith.constant 0 : i32
    %c0_i32_1 = arith.constant 0 : i32
    return %c0_i32, %c0_i32_0 : i32, i32
  }
  func.func @transform_3(%arg0: i32) -> (i32, i32) {
    %c0_i32 = arith.constant 0 : i32
    %c0_i32_0 = arith.constant 0 : i32
    %c0_i32_1 = arith.constant 0 : i32
    return %c0_i32, %c0_i32_0 : i32, i32
  }
  func.func @transform_4(%arg0: i32) -> (i32, i32) {
    %c0_i32 = arith.constant 0 : i32
    %c0_i32_0 = arith.constant 0 : i32
    %c0_i32_1 = arith.constant 0 : i32
    return %c0_i32, %c0_i32_0 : i32, i32
  }
  func.func @transform_5(%arg0: i32) -> (i32, i32) {
    %c0_i32 = arith.constant 0 : i32
    %c0_i32_0 = arith.constant 0 : i32
    %c0_i32_1 = arith.constant 0 : i32
    return %c0_i32, %c0_i32_0 : i32, i32
  }
  func.func @transform_6(%arg0: i32) -> (i32, i32) {
    %c0_i32 = arith.constant 0 : i32
    %c0_i32_0 = arith.constant 0 : i32
    %c0_i32_1 = arith.constant 0 : i32
    return %c0_i32, %c0_i32_0 : i32, i32
  }
  func.func @transform_7(%arg0: i32) -> (i32, i32) {
    %c0_i32 = arith.constant 0 : i32
    %c0_i32_0 = arith.constant 0 : i32
    %c0_i32_1 = arith.constant 0 : i32
    return %c0_i32, %c0_i32_0 : i32, i32
  }
  func.func @transform_8(%arg0: i32) -> (i32, i32) {
    %c0_i32 = arith.constant 0 : i32
    %c0_i32_0 = arith.constant 0 : i32
    %c0_i32_1 = arith.constant 0 : i32
    return %c0_i32, %c0_i32_0 : i32, i32
  }
  func.func @transform_9(%arg0: i32) -> (i32, i32) {
    %c0_i32 = arith.constant 0 : i32
    %c0_i32_0 = arith.constant 0 : i32
    return %arg0, %c0_i32 : i32, i32
  }
}

</mosaic_0001>

<bundles_post_ra>
// kernel: basic_conv2d_forward.1
= control target key start
LH: loop header
LB: loop body
LE: loop exit
PB: predicated region body
PF: predicated region fallthrough
CT: control target
= control target key end

     0   :  { %v1891_v3 = vmov 0.0   ;;  %vm1893_vm0 = vmmov 0   ;;  %s3294_s1 = inlined_call_operand.vmem [shape: f32[128,256], index: 1, kind: input, shape index: {}]   ;;  %s3295_s3 = inlined_call_operand.vmem [shape: f32[256,1024], index: 3, kind: input, shape index: {}]   ;;  %s3296_s0 = inlined_call_operand.vmem [shape: f32[8,128], index: 0, kind: input, shape index: {}]   ;;  %s3297_s2 = inlined_call_operand.vmem [shape: f32[1,256], index: 2, kind: input, shape index: {}]   ;;  %s3298_s5 = inlined_call_operand.vmem [shape: f32[1024,128], index: 5, kind: input, shape index: {}]   ;;  %s3299_s4 = inlined_call_operand.vmem [shape: f32[1,1024], index: 4, kind: input, shape index: {}]   ;;  %s3300_s7 = inlined_call_operand.vmem [shape: f32[128,128], index: 7, kind: input, shape index: {}]   ;;  %s3301_s6 = inlined_call_operand.vmem [shape: f32[1,128], index: 6, kind: input, shape index: {}]   ;;  %s3302_s8 = inlined_call_operand.vmem [shape: f32[1,128], index: 8, kind: input, shape index: {}]   ;;  %s3303_s9 = inlined_call_operand.vmem [shape: f32[8,128], index: 9, kind: output, shape index: {}]  }
   0x1   :  { %v34_v0 = vld [vmem:[%s3294_s1 + $0x8] sm:$0xff]  ;;  %v36_v1 = vld [vmem:[%s3294_s1 + $0x18] sm:$0xff]  ;;  %v33_v2 = vld [vmem:[%s3294_s1] sm:$0xff]  ;;  %141 = vmatprep.mubr.f32.mxu0 %v1891_v3 }
   0x2   :  { %v1448_v4 = vpack.c.bf16 %v36_v1, %v34_v0  ;;  %v35_v5 = vld [vmem:[%s3294_s1 + $0x10] sm:$0xff]  ;;  %v38_v6 = vld [vmem:[%s3294_s1 + $0x28] sm:$0xff]  ;;  %v40_v7 = vld [vmem:[%s3294_s1 + $0x38] sm:$0xff] }
   0x3   :  { %v1450_v8 = vpack.c.bf16 %v35_v5, %v33_v2  ;;  %v1452_v9 = vpack.c.bf16 %v40_v7, %v38_v6  ;;  %v37_v10 = vld [vmem:[%s3294_s1 + $0x20] sm:$0xff]  ;;  %v39_v11 = vld [vmem:[%s3294_s1 + $0x30] sm:$0xff]  ;;  %v42_v12 = vld [vmem:[%s3294_s1 + $0x48] sm:$0xff] }
   0x4   :  { %1449 = vmatprep.subr.bf16.mxu0 %v1448_v4  ;;  %v44_v13 = vld [vmem:[%s3294_s1 + $0x58] sm:$0xff]  ;;  %v1454_v14 = vpack.c.bf16 %v39_v11, %v37_v10  ;;  %v41_v16 = vld [vmem:[%s3294_s1 + $0x40] sm:$0xff]  ;;  %v43_v17 = vld [vmem:[%s3294_s1 + $0x50] sm:$0xff] }
   0x5   :  { %1451 = vmatpush1.bf16.msra.mxu0 %v1450_v8  ;;  %v1456_v15 = vpack.c.bf16 %v44_v13, %v42_v12  ;;  %v46_v18 = vld [vmem:[%s3294_s1 + $0x68] sm:$0xff]  ;;  %v48_v19 = vld [vmem:[%s3294_s1 + $0x78] sm:$0xff]  ;;  %v1458_v20 = vpack.c.bf16 %v43_v17, %v41_v16  ;;  %v45_v22 = vld [vmem:[%s3294_s1 + $0x60] sm:$0xff] }
   0x6   :  { %1453 = vmatprep.subr.bf16.mxu0 %v1452_v9  ;;  %v1460_v21 = vpack.c.bf16 %v48_v19, %v46_v18  ;;  %v47_v23 = vld [vmem:[%s3294_s1 + $0x70] sm:$0xff]  ;;  %v50_v24 = vld [vmem:[%s3294_s1 + $0x88] sm:$0xff]  ;;  %v52_v25 = vld [vmem:[%s3294_s1 + $0x98] sm:$0xff] }
   0x7   :  { %v151_v26 = vld [vmem:[%s3295_s3 + $0x8] sm:$0xff]  ;;  %v1462_v28 = vpack.c.bf16 %v47_v23, %v45_v22  ;;  %v150_v30 = vld [vmem:[%s3295_s3] sm:$0xff]  ;;  %v1464_v32 = vpack.c.bf16 %v52_v25, %v50_v24  ;;  %v51_v34 = vld [vmem:[%s3294_s1 + $0x90] sm:$0xff] }
   0x8   :  { %v159_v27 = vld [vmem:[%s3295_s3 + $0x48] sm:$0xff]  ;;  %v158_v31 = vld [vmem:[%s3295_s3 + $0x40] sm:$0xff]  ;;  %v56_v38 = vld [vmem:[%s3294_s1 + $0xb8] sm:$0xff] }
   0x9   :  { %1455 = vmatpush1.bf16.msra.mxu0 %v1454_v14  ;;  %v1480_v29 = vpack.c.bf16 %v159_v27, %v151_v26  ;;  %v49_v33 = vld [vmem:[%s3294_s1 + $0x80] sm:$0xff]  ;;  %v1482_v35 = vpack.c.bf16 %v158_v31, %v150_v30  ;;  %v167_v36 = vld [vmem:[%s3295_s3 + $0x88] sm:$0xff]  ;;  %v55_v49 = vld [vmem:[%s3294_s1 + $0xb0] sm:$0xff] }
   0xa   :  { %1457 = vmatprep.subr.bf16.mxu0 %v1456_v15  ;;  %v54_v37 = vld [vmem:[%s3294_s1 + $0xa8] sm:$0xff]  ;;  %v166_v41 = vld [vmem:[%s3295_s3 + $0x80] sm:$0xff]  ;;  %v1466_v43 = vpack.c.bf16 %v51_v34, %v49_v33  ;;  %v60_v53 = vld [vmem:[%s3294_s1 + $0xd8] sm:$0xff] }
   0xb   :  { %1481 = vmatprep.subr.bf16.mxu1 %v1480_v29  ;;  %v175_v39 = vld [vmem:[%s3295_s3 + $0xc8] sm:$0xff]  ;;  %v174_v42 = vld [vmem:[%s3295_s3 + $0xc0] sm:$0xff]  ;;  %v1468_v47 = vpack.c.bf16 %v56_v38, %v54_v37  ;;  %v59_v0 = vld [vmem:[%s3294_s1 + $0xd0] sm:$0xff] }
   0xc   :  { %1483 = vmatpush1.bf16.msra.mxu1 %v1482_v35  ;;  %v1484_v40 = vpack.c.bf16 %v175_v39, %v167_v36  ;;  %v1486_v44 = vpack.c.bf16 %v174_v42, %v166_v41  ;;  %v183_v45 = vld [vmem:[%s3295_s3 + $0x108] sm:$0xff]  ;;  %v53_v48 = vld [vmem:[%s3294_s1 + $0xa0] sm:$0xff]  ;;  %v64_v4 = vld [vmem:[%s3294_s1 + $0xf8] sm:$0xff] }
   0xd   :  { %1459 = vmatpush1.bf16.msra.mxu0 %v1458_v20  ;;  %v191_v46 = vld [vmem:[%s3295_s3 + $0x148] sm:$0xff]  ;;  %v182_v51 = vld [vmem:[%s3295_s3 + $0x100] sm:$0xff]  ;;  %v1470_v58 = vpack.c.bf16 %v55_v49, %v53_v48  ;;  %v63_v13 = vld [vmem:[%s3294_s1 + $0xf0] sm:$0xff] }
   0xe   :  { %1461 = vmatprep.subr.bf16.mxu0 %v1460_v21  ;;  %1485 = vmatprep.subr.bf16.mxu1 %v1484_v40  ;;  %v1488_v50 = vpack.c.bf16 %v191_v46, %v183_v45  ;;  %v58_v52 = vld [vmem:[%s3294_s1 + $0xc8] sm:$0xff]  ;;  %v190_v54 = vld [vmem:[%s3295_s3 + $0x140] sm:$0xff]  ;;  %v153_v16 = vld [vmem:[%s3295_s3 + $0x18] sm:$0xff] }
   0xf   :  { %v1490_v55 = vpack.c.bf16 %v190_v54, %v182_v51  ;;  %v199_v56 = vld [vmem:[%s3295_s3 + $0x188] sm:$0xff]  ;;  %v198_v60 = vld [vmem:[%s3295_s3 + $0x180] sm:$0xff]  ;;  %v1472_v62 = vpack.c.bf16 %v60_v53, %v58_v52  ;;  %v161_v17 = vld [vmem:[%s3295_s3 + $0x58] sm:$0xff] }
  0x10   :  { %1487 = vmatpush1.bf16.msra.mxu1 %v1486_v44  ;;  %v207_v57 = vld [vmem:[%s3295_s3 + $0x1c8] sm:$0xff]  ;;  %v206_v61 = vld [vmem:[%s3295_s3 + $0x1c0] sm:$0xff]  ;;  %v152_v20 = vld [vmem:[%s3295_s3 + $0x10] sm:$0xff]  ;;  %v1544_v24 = vpack.c.bf16 %v161_v17, %v153_v16 }
  0x11   :  { %1463 = vmatpush1.bf16.msra.mxu0 %v1462_v28  ;;  %1489 = vmatprep.subr.bf16.mxu1 %v1488_v50  ;;  %v1492_v59 = vpack.c.bf16 %v207_v57, %v199_v56  ;;  %v57_v63 = vld [vmem:[%s3294_s1 + $0xc0] sm:$0xff]  ;;  %v215_v1 = vld [vmem:[%s3295_s3 + $0x208] sm:$0xff]  ;;  %v1494_v6 = vpack.c.bf16 %v206_v61, %v198_v60  ;;  %v160_v25 = vld [vmem:[%s3295_s3 + $0x50] sm:$0xff] }
  0x12   :  { %1465 = vmatprep.subr.bf16.mxu0 %v1464_v32  ;;  %v62_v2 = vld [vmem:[%s3294_s1 + $0xe8] sm:$0xff]  ;;  %v1474_v7 = vpack.c.bf16 %v59_v0, %v57_v63  ;;  %v61_v8 = vld [vmem:[%s3294_s1 + $0xe0] sm:$0xff]  ;;  %v169_v28 = vld [vmem:[%s3295_s3 + $0x98] sm:$0xff]  ;;  %v1546_v32 = vpack.c.bf16 %v160_v25, %v152_v20 }
  0x13   :  { %v223_v5 = vld [vmem:[%s3295_s3 + $0x248] sm:$0xff]  ;;  %v214_v10 = vld [vmem:[%s3295_s3 + $0x200] sm:$0xff]  ;;  %v1476_v12 = vpack.c.bf16 %v64_v4, %v62_v2  ;;  %v1478_v19 = vpack.c.bf16 %v63_v13, %v61_v8  ;;  %v177_v29 = vld [vmem:[%s3295_s3 + $0xd8] sm:$0xff] }
  0x14   :  { %1491 = vmatpush1.bf16.msra.mxu1 %v1490_v55  ;;  %v1496_v9 = vpack.c.bf16 %v223_v5, %v215_v1  ;;  %v222_v11 = vld [vmem:[%s3295_s3 + $0x240] sm:$0xff]  ;;  %v231_v14 = vld [vmem:[%s3295_s3 + $0x288] sm:$0xff]  ;;  %v168_v33 = vld [vmem:[%s3295_s3 + $0x90] sm:$0xff]  ;;  %v1548_v37 = vpack.c.bf16 %v177_v29, %v169_v28 }
  0x15   :  { %1467 = vmatpush1.bf16.msra.mxu0 %v1466_v43  ;;  %1493 = vmatprep.subr.bf16.mxu1 %v1492_v59  ;;  %v239_v15 = vld [vmem:[%s3295_s3 + $0x2c8] sm:$0xff]  ;;  %v1498_v18 = vpack.c.bf16 %v222_v11, %v214_v10  ;;  %v230_v22 = vld [vmem:[%s3295_s3 + $0x280] sm:$0xff]  ;;  %v176_v38 = vld [vmem:[%s3295_s3 + $0xd0] sm:$0xff] }
  0x16   :  { %1469 = vmatprep.subr.bf16.mxu0 %v1468_v47  ;;  %v1500_v21 = vpack.c.bf16 %v239_v15, %v231_v14  ;;  %v238_v23 = vld [vmem:[%s3295_s3 + $0x2c0] sm:$0xff]  ;;  %v247_v26 = vld [vmem:[%s3295_s3 + $0x308] sm:$0xff]  ;;  %v185_v41 = vld [vmem:[%s3295_s3 + $0x118] sm:$0xff]  ;;  %v1550_v44 = vpack.c.bf16 %v176_v38, %v168_v33 }
  0x17   :  { %v255_v27 = vld [vmem:[%s3295_s3 + $0x348] sm:$0xff]  ;;  %v32_v30 = vld [vmem:[%s3296_s0] sm:$0xff]  ;;  %v1502_v31 = vpack.c.bf16 %v238_v23, %v230_v22  ;;  %v193_v42 = vld [vmem:[%s3295_s3 + $0x158] sm:$0xff] }
  0x18   :  { %1495 = vmatpush1.bf16.msra.mxu1 %v1494_v6  ;;  %v1504_v34 = vpack.c.bf16 %v255_v27, %v247_v26  ;;  %v246_v35 = vld [vmem:[%s3295_s3 + $0x300] sm:$0xff]  ;;  %v263_v39 = vld [vmem:[%s3295_s3 + $0x388] sm:$0xff]  ;;  %v184_v45 = vld [vmem:[%s3295_s3 + $0x110] sm:$0xff]  ;;  %v1552_v49 = vpack.c.bf16 %v193_v42, %v185_v41 }
  0x19   :  { %1471 = vmatpush1.bf16.msra.mxu0 %v1470_v58  ;;  %1497 = vmatprep.subr.bf16.mxu1 %v1496_v9  ;;  %v254_v36 = vld [vmem:[%s3295_s3 + $0x340] sm:$0xff]  ;;  %v271_v40 = vld [vmem:[%s3295_s3 + $0x3c8] sm:$0xff]  ;;  %v192_v50 = vld [vmem:[%s3295_s3 + $0x150] sm:$0xff] }
  0x1a   :  { %1473 = vmatprep.subr.bf16.mxu0 %v1472_v62  ;;  %v1506_v43 = vpack.c.bf16 %v254_v36, %v246_v35  ;;  %v1508_v46 = vpack.c.bf16 %v271_v40, %v263_v39  ;;  %v262_v47 = vld [vmem:[%s3295_s3 + $0x380] sm:$0xff]  ;;  %v279_v51 = vld [vmem:[%s3295_s3 + $0x408] sm:$0xff]  ;;  %v201_v53 = vld [vmem:[%s3295_s3 + $0x198] sm:$0xff]  ;;  %v1554_v56 = vpack.c.bf16 %v192_v50, %v184_v45 }
  0x1b   :  { %v270_v48 = vld [vmem:[%s3295_s3 + $0x3c0] sm:$0xff]  ;;  %v287_v52 = vld [vmem:[%s3295_s3 + $0x448] sm:$0xff]  ;;  %v209_v54 = vld [vmem:[%s3295_s3 + $0x1d8] sm:$0xff] }
  0x1c   :  { %1499 = vmatpush1.bf16.msra.mxu1 %v1498_v18  ;;  %v1510_v55 = vpack.c.bf16 %v270_v48, %v262_v47  ;;  %v200_v57 = vld [vmem:[%s3295_s3 + $0x190] sm:$0xff]  ;;  %v1512_v58 = vpack.c.bf16 %v287_v52, %v279_v51  ;;  %v278_v59 = vld [vmem:[%s3295_s3 + $0x400] sm:$0xff]  ;;  %v1556_v61 = vpack.c.bf16 %v209_v54, %v201_v53  ;;  %v295_v63 = vld [vmem:[%s3295_s3 + $0x488] sm:$0xff] }
  0x1d   :  { %1475 = vmatpush1.bf16.msra.mxu0 %v1474_v7  ;;  %1501 = vmatprep.subr.bf16.mxu1 %v1500_v21  ;;  %v286_v60 = vld [vmem:[%s3295_s3 + $0x440] sm:$0xff]  ;;  %v208_v62 = vld [vmem:[%s3295_s3 + $0x1d0] sm:$0xff]  ;;  %v303_v0 = vld [vmem:[%s3295_s3 + $0x4c8] sm:$0xff] }
  0x1e   :  { %1477 = vmatprep.subr.bf16.mxu0 %v1476_v12  ;;  %v217_v1 = vld [vmem:[%s3295_s3 + $0x218] sm:$0xff]  ;;  %v1514_v4 = vpack.c.bf16 %v286_v60, %v278_v59  ;;  %v1558_v5 = vpack.c.bf16 %v208_v62, %v200_v57  ;;  %v216_v6 = vld [vmem:[%s3295_s3 + $0x210] sm:$0xff]  ;;  %v1516_v7 = vpack.c.bf16 %v303_v0, %v295_v63  ;;  %v294_v8 = vld [vmem:[%s3295_s3 + $0x480] sm:$0xff] }
  0x1f   :  { %v225_v2 = vld [vmem:[%s3295_s3 + $0x258] sm:$0xff]  ;;  %v302_v9 = vld [vmem:[%s3295_s3 + $0x4c0] sm:$0xff]  ;;  %v224_v11 = vld [vmem:[%s3295_s3 + $0x250] sm:$0xff] }
  0x20   :  { %1503 = vmatpush1.bf16.msra.mxu1 %v1502_v31  ;;  %v1560_v10 = vpack.c.bf16 %v225_v2, %v217_v1  ;;  %v311_v12 = vld [vmem:[%s3295_s3 + $0x508] sm:$0xff]  ;;  %v233_v14 = vld [vmem:[%s3295_s3 + $0x298] sm:$0xff]  ;;  %v1518_v16 = vpack.c.bf16 %v302_v9, %v294_v8  ;;  %v1562_v17 = vpack.c.bf16 %v224_v11, %v216_v6  ;;  %v232_v18 = vld [vmem:[%s3295_s3 + $0x290] sm:$0xff] }
  0x21   :  { %1479 = vmatpush1.bf16.msra.mxu0 %v1478_v19  ;;  %1505 = vmatprep.subr.bf16.mxu1 %v1504_v34  ;;  %v319_v13 = vld [vmem:[%s3295_s3 + $0x548] sm:$0xff]  ;;  %v241_v15 = vld [vmem:[%s3295_s3 + $0x2d8] sm:$0xff]  ;;  %v310_v20 = vld [vmem:[%s3295_s3 + $0x500] sm:$0xff] }
  0x22   :  { %1545 = vmatprep.subr.bf16.mxu0 %v1544_v24  ;;  %v1520_v19 = vpack.c.bf16 %v319_v13, %v311_v12  ;;  %v318_v21 = vld [vmem:[%s3295_s3 + $0x540] sm:$0xff]  ;;  %v1564_v22 = vpack.c.bf16 %v241_v15, %v233_v14  ;;  %v240_v23 = vld [vmem:[%s3295_s3 + $0x2d0] sm:$0xff]  ;;  %v327_v24 = vld [vmem:[%s3295_s3 + $0x588] sm:$0xff] }
  0x23   :  { %v335_v25 = vld [vmem:[%s3295_s3 + $0x5c8] sm:$0xff]  ;;  %v249_v26 = vld [vmem:[%s3295_s3 + $0x318] sm:$0xff]  ;;  %v1522_v28 = vpack.c.bf16 %v318_v21, %v310_v20  ;;  %v1566_v29 = vpack.c.bf16 %v240_v23, %v232_v18  ;;  %v334_v33 = vld [vmem:[%s3295_s3 + $0x5c0] sm:$0xff] }
  0x24   :  { %142 = vmatmul.mubr.f32.vlgmr.msra.gmra.mrb[0].mxu0 %v32_v30  ;;  %1507 = vmatpush1.bf16.msra.mxu1 %v1506_v43  ;;  %v257_v27 = vld [vmem:[%s3295_s3 + $0x358] sm:$0xff]  ;;  %v248_v30 = vld [vmem:[%s3295_s3 + $0x310] sm:$0xff]  ;;  %v1524_v31 = vpack.c.bf16 %v335_v25, %v327_v24  ;;  %v343_v36 = vld [vmem:[%s3295_s3 + $0x608] sm:$0xff] }
  0x25   :  { %1547 = vmatpush1.bf16.msra.mxu0 %v1546_v32  ;;  %1509 = vmatprep.subr.bf16.mxu1 %v1508_v46  ;;  %v326_v32 = vld [vmem:[%s3295_s3 + $0x580] sm:$0xff]  ;;  %v1568_v34 = vpack.c.bf16 %v257_v27, %v249_v26  ;;  %v256_v35 = vld [vmem:[%s3295_s3 + $0x350] sm:$0xff]  ;;  %v265_v38 = vld [vmem:[%s3295_s3 + $0x398] sm:$0xff] }
  0x26   :  { %1549 = vmatprep.subr.bf16.mxu0 %v1548_v37  ;;  %v351_v37 = vld [vmem:[%s3295_s3 + $0x648] sm:$0xff]  ;;  %v273_v39 = vld [vmem:[%s3295_s3 + $0x3d8] sm:$0xff]  ;;  %v1526_v40 = vpack.c.bf16 %v334_v33, %v326_v32  ;;  %v1570_v41 = vpack.c.bf16 %v256_v35, %v248_v30  ;;  %v264_v42 = vld [vmem:[%s3295_s3 + $0x390] sm:$0xff] }
  0x27   :  { %v1528_v43 = vpack.c.bf16 %v351_v37, %v343_v36  ;;  %v350_v45 = vld [vmem:[%s3295_s3 + $0x640] sm:$0xff]  ;;  %v1572_v46 = vpack.c.bf16 %v273_v39, %v265_v38  ;;  %v272_v47 = vld [vmem:[%s3295_s3 + $0x3d0] sm:$0xff]  ;;  %v359_v48 = vld [vmem:[%s3295_s3 + $0x688] sm:$0xff] }
  0x28   :  { %1511 = vmatpush1.bf16.msra.mxu1 %v1510_v55  ;;  %v281_v50 = vld [vmem:[%s3295_s3 + $0x418] sm:$0xff]  ;;  %v1574_v53 = vpack.c.bf16 %v272_v47, %v264_v42  ;;  %v280_v54 = vld [vmem:[%s3295_s3 + $0x410] sm:$0xff]  ;;  %v366_v57 = vld [vmem:[%s3295_s3 + $0x6c0] sm:$0xff] }
  0x29   :  { %1551 = vmatpush1.bf16.msra.mxu0 %v1550_v44  ;;  %1513 = vmatprep.subr.bf16.mxu1 %v1512_v58  ;;  %v342_v44 = vld [vmem:[%s3295_s3 + $0x600] sm:$0xff]  ;;  %v289_v51 = vld [vmem:[%s3295_s3 + $0x458] sm:$0xff]  ;;  %v288_v59 = vld [vmem:[%s3295_s3 + $0x450] sm:$0xff] }
  0x2a   :  { %1553 = vmatprep.subr.bf16.mxu0 %v1552_v49  ;;  %v367_v49 = vld [vmem:[%s3295_s3 + $0x6c8] sm:$0xff]  ;;  %v1530_v52 = vpack.c.bf16 %v350_v45, %v342_v44  ;;  %v1576_v58 = vpack.c.bf16 %v289_v51, %v281_v50  ;;  %v297_v62 = vld [vmem:[%s3295_s3 + $0x498] sm:$0xff]  ;;  %v1578_v1 = vpack.c.bf16 %v288_v59, %v280_v54  ;;  %v304_v8 = vld [vmem:[%s3295_s3 + $0x4d0] sm:$0xff]  ;;  %v67_v59 = vlaneseq }
  0x2b   :  { %v1532_v55 = vpack.c.bf16 %v367_v49, %v359_v48  ;;  %v375_v60 = vld [vmem:[%s3295_s3 + $0x708] sm:$0xff]  ;;  %v305_v63 = vld [vmem:[%s3295_s3 + $0x4d8] sm:$0xff]  ;;  %v312_v14 = vld [vmem:[%s3295_s3 + $0x510] sm:$0xff] }
  0x2c   :  { %1515 = vmatpush1.bf16.msra.mxu1 %v1514_v4  ;;  %v374_v4 = vld [vmem:[%s3295_s3 + $0x700] sm:$0xff]  ;;  %v1580_v6 = vpack.c.bf16 %v305_v63, %v297_v62  ;;  %v313_v9 = vld [vmem:[%s3295_s3 + $0x518] sm:$0xff]  ;;  %v320_v15 = vld [vmem:[%s3295_s3 + $0x550] sm:$0xff] }
  0x2d   :  { %1555 = vmatpush1.bf16.msra.mxu0 %v1554_v56  ;;  %1517 = vmatprep.subr.bf16.mxu1 %v1516_v7  ;;  %v358_v56 = vld [vmem:[%s3295_s3 + $0x680] sm:$0xff]  ;;  %v296_v7 = vld [vmem:[%s3295_s3 + $0x490] sm:$0xff]  ;;  %v1586_v18 = vpack.c.bf16 %v320_v15, %v312_v14  ;;  %v353_v23 = vld [vmem:[%s3295_s3 + $0x658] sm:$0xff] }
  0x2e   :  { %1557 = vmatprep.subr.bf16.mxu0 %v1556_v61  ;;  %v383_v61 = vld [vmem:[%s3295_s3 + $0x748] sm:$0xff]  ;;  %v1534_v0 = vpack.c.bf16 %v366_v57, %v358_v56  ;;  %v1582_v12 = vpack.c.bf16 %v304_v8, %v296_v7  ;;  %v328_v20 = vld [vmem:[%s3295_s3 + $0x590] sm:$0xff]  ;;  %v385_v35 = vld [vmem:[%s3295_s3 + $0x758] sm:$0xff] }
  0x2f   :  { %v1536_v2 = vpack.c.bf16 %v383_v61, %v375_v60  ;;  %v336_v21 = vld [vmem:[%s3295_s3 + $0x5d0] sm:$0xff]  ;;  %v399_v42 = vld [vmem:[%s3295_s3 + $0x7c8] sm:$0xff]  ;;  %v401_v45 = vld [vmem:[%s3295_s3 + $0x7d8] sm:$0xff]  ;;  %v2440_v60 = vshrl.u32 %v67_v59, 7 }
  0x30   :  { %1519 = vmatpush1.bf16.msra.mxu1 %v1518_v16  ;;  %v329_v16 = vld [vmem:[%s3295_s3 + $0x598] sm:$0xff]  ;;  %v1590_v24 = vpack.c.bf16 %v336_v21, %v328_v20  ;;  %v344_v26 = vld [vmem:[%s3295_s3 + $0x610] sm:$0xff]  ;;  %v398_v47 = vld [vmem:[%s3295_s3 + $0x7c0] sm:$0xff] }
  0x31   :  { %1559 = vmatpush1.bf16.msra.mxu0 %v1558_v5  ;;  %1521 = vmatprep.subr.bf16.mxu1 %v1520_v19  ;;  %v382_v5 = vld [vmem:[%s3295_s3 + $0x740] sm:$0xff]  ;;  %v352_v27 = vld [vmem:[%s3295_s3 + $0x650] sm:$0xff]  ;;  %v163_v54 = vld [vmem:[%s3295_s3 + $0x68] sm:$0xff]  ;;  %v69_v61 = vsub.s32 0, %v2440_v60  ;;  %v73_v63 = vsub.s32 1, %v2440_v60 }
  0x32   :  { %1561 = vmatprep.subr.bf16.mxu0 %v1560_v10  ;;  %v321_v10 = vld [vmem:[%s3295_s3 + $0x558] sm:$0xff]  ;;  %v1538_v11 = vpack.c.bf16 %v382_v5, %v374_v4  ;;  %v1594_v30 = vpack.c.bf16 %v352_v27, %v344_v26  ;;  %v360_v32 = vld [vmem:[%s3295_s3 + $0x690] sm:$0xff]  ;;  %v65_v62 = vld [vmem:[%s3297_s2] sm:$0x3] }
  0x33   :  { %v1584_v13 = vpack.c.bf16 %v321_v10, %v313_v9  ;;  %v368_v33 = vld [vmem:[%s3295_s3 + $0x6d0] sm:$0xff]  ;;  %v165_v57 = vld [vmem:[%s3295_s3 + $0x78] sm:$0xff]  ;;  %v154_v4 = vld [vmem:[%s3295_s3 + $0x20] sm:$0xff] }
  0x34   :  { %1523 = vmatpush1.bf16.msra.mxu1 %v1522_v28  ;;  %v361_v28 = vld [vmem:[%s3295_s3 + $0x698] sm:$0xff]  ;;  %v1598_v36 = vpack.c.bf16 %v368_v33, %v360_v32  ;;  %v376_v38 = vld [vmem:[%s3295_s3 + $0x710] sm:$0xff]  ;;  %v162_v7 = vld [vmem:[%s3295_s3 + $0x60] sm:$0xff] }
  0x35   :  { %1563 = vmatpush1.bf16.msra.mxu0 %v1562_v17  ;;  %1525 = vmatprep.subr.bf16.mxu1 %v1524_v31  ;;  %v337_v17 = vld [vmem:[%s3295_s3 + $0x5d8] sm:$0xff]  ;;  %v384_v39 = vld [vmem:[%s3295_s3 + $0x750] sm:$0xff]  ;;  %v195_v26 = vld [vmem:[%s3295_s3 + $0x168] sm:$0xff] }
  0x36   :  { %1565 = vmatprep.subr.bf16.mxu0 %v1564_v22  ;;  %v1588_v19 = vpack.c.bf16 %v337_v17, %v329_v16  ;;  %v345_v22 = vld [vmem:[%s3295_s3 + $0x618] sm:$0xff]  ;;  %v392_v50 = vld [vmem:[%s3295_s3 + $0x790] sm:$0xff]  ;;  %v1610_v16 = vpack.c.bf16 %v162_v7, %v154_v4  ;;  %v194_v32 = vld [vmem:[%s3295_s3 + $0x160] sm:$0xff] }
  0x37   :  { %v1592_v25 = vpack.c.bf16 %v353_v23, %v345_v22  ;;  %v400_v51 = vld [vmem:[%s3295_s3 + $0x7d0] sm:$0xff]  ;;  %v181_v14 = vld [vmem:[%s3295_s3 + $0xf8] sm:$0xff]  ;;  %v187_v23 = vld [vmem:[%s3295_s3 + $0x128] sm:$0xff] }
  0x38   :  { %1527 = vmatpush1.bf16.msra.mxu1 %v1526_v40  ;;  %v1602_v40 = vpack.c.bf16 %v384_v39, %v376_v38  ;;  %v156_v8 = vld [vmem:[%s3295_s3 + $0x30] sm:$0xff]  ;;  %v189_v27 = vld [vmem:[%s3295_s3 + $0x138] sm:$0xff]  ;;  %v1616_v33 = vpack.c.bf16 %v195_v26, %v187_v23  ;;  %v211_v38 = vld [vmem:[%s3295_s3 + $0x1e8] sm:$0xff] }
  0x39   :  { %1567 = vmatpush1.bf16.msra.mxu0 %v1566_v29  ;;  %1529 = vmatprep.subr.bf16.mxu1 %v1528_v43  ;;  %v369_v29 = vld [vmem:[%s3295_s3 + $0x6d8] sm:$0xff]  ;;  %v164_v9 = vld [vmem:[%s3295_s3 + $0x70] sm:$0xff]  ;;  %v234_v7 = vld [vmem:[%s3295_s3 + $0x2a0] sm:$0xff] }
  0x3a   :  { %1569 = vmatprep.subr.bf16.mxu0 %v1568_v34  ;;  %v1596_v31 = vpack.c.bf16 %v369_v29, %v361_v28  ;;  %v377_v34 = vld [vmem:[%s3295_s3 + $0x718] sm:$0xff]  ;;  %v1674_v17 = vpack.c.bf16 %v164_v9, %v156_v8  ;;  %v172_v21 = vld [vmem:[%s3295_s3 + $0xb0] sm:$0xff]  ;;  %v242_v8 = vld [vmem:[%s3295_s3 + $0x2e0] sm:$0xff] }
  0x3b   :  { %v1600_v37 = vpack.c.bf16 %v385_v35, %v377_v34  ;;  %v393_v43 = vld [vmem:[%s3295_s3 + $0x798] sm:$0xff]  ;;  %v180_v22 = vld [vmem:[%s3295_s3 + $0xf0] sm:$0xff]  ;;  %v267_v26 = vld [vmem:[%s3295_s3 + $0x3a8] sm:$0xff] }
  0x3c   :  { %1531 = vmatpush1.bf16.msra.mxu1 %v1530_v52  ;;  %v1604_v48 = vpack.c.bf16 %v401_v45, %v393_v43  ;;  %v1606_v52 = vpack.c.bf16 %v400_v51, %v392_v50  ;;  %v197_v28 = vld [vmem:[%s3295_s3 + $0x178] sm:$0xff]  ;;  %v188_v35 = vld [vmem:[%s3295_s3 + $0x130] sm:$0xff]  ;;  %v202_v43 = vld [vmem:[%s3295_s3 + $0x1a0] sm:$0xff] }
  0x3d   :  { %1571 = vmatpush1.bf16.msra.mxu0 %v1570_v41  ;;  %1533 = vmatprep.subr.bf16.mxu1 %v1532_v55  ;;  %v391_v41 = vld [vmem:[%s3295_s3 + $0x788] sm:$0xff]  ;;  %v157_v55 = vld [vmem:[%s3295_s3 + $0x38] sm:$0xff]  ;;  %v1680_v34 = vpack.c.bf16 %v197_v28, %v189_v27  ;;  %v220_v59 = vld [vmem:[%s3295_s3 + $0x230] sm:$0xff] }
  0x3e   :  { %1573 = vmatprep.subr.bf16.mxu0 %v1572_v46  ;;  %v1540_v44 = vpack.c.bf16 %v399_v42, %v391_v41  ;;  %v390_v46 = vld [vmem:[%s3295_s3 + $0x780] sm:$0xff]  ;;  %v205_v39 = vld [vmem:[%s3295_s3 + $0x1b8] sm:$0xff]  ;;  %v227_v50 = vld [vmem:[%s3295_s3 + $0x268] sm:$0xff] }
  0x3f   :  { %v1542_v49 = vpack.c.bf16 %v398_v47, %v390_v46  ;;  %v204_v47 = vld [vmem:[%s3295_s3 + $0x1b0] sm:$0xff]  ;;  %v221_v51 = vld [vmem:[%s3295_s3 + $0x238] sm:$0xff]  ;;  %v275_v27 = vld [vmem:[%s3295_s3 + $0x3e8] sm:$0xff] }
  0x40   :  { %1535 = vmatpush1.bf16.msra.mxu1 %v1534_v0  ;;  %v70_v0 = vrot.slane %v65_v62, %v69_v61  ;;  %v245_v4 = vld [vmem:[%s3295_s3 + $0x2f8] sm:$0xff] }
  0x41   :  { %1575 = vmatpush1.bf16.msra.mxu0 %v1574_v53  ;;  %1537 = vmatprep.subr.bf16.mxu1 %v1536_v2  ;;  %v155_v53 = vld [vmem:[%s3295_s3 + $0x28] sm:$0xff]  ;;  %v269_v28 = vld [vmem:[%s3295_s3 + $0x3b8] sm:$0xff] }
  0x42   :  { %1577 = vmatprep.subr.bf16.mxu0 %v1576_v58  ;;  %v1608_v56 = vpack.c.bf16 %v163_v54, %v155_v53  ;;  %v1672_v58 = vpack.c.bf16 %v165_v57, %v157_v55  ;;  %v218_v55 = vld [vmem:[%s3295_s3 + $0x220] sm:$0xff] }
  0x44   :  { %1539 = vmatpush1.bf16.msra.mxu1 %v1538_v11  ;;  %v171_v11 = vld [vmem:[%s3295_s3 + $0xa8] sm:$0xff] }
  0x45   :  { %1579 = vmatpush1.bf16.msra.mxu0 %v1578_v1  ;;  %1541 = vmatprep.subr.bf16.mxu1 %v1540_v44  ;;  %v74_v1 = vrot.slane %v65_v62, %v73_v63  ;;  %v210_v44 = vld [vmem:[%s3295_s3 + $0x1e0] sm:$0xff]  ;;  %v228_v62 = vld [vmem:[%s3295_s3 + $0x270] sm:$0xff] }
  0x46   :  { %1581 = vmatprep.subr.bf16.mxu0 %v1580_v6  ;;  %v1622_v53 = vpack.c.bf16 %v210_v44, %v202_v43  ;;  %v282_v44 = vld [vmem:[%s3295_s3 + $0x420] sm:$0xff] }
  0x48   :  { %1543 = vmatpush1.bf16.msra.mxu1 %v1542_v49  ;;  %v219_v49 = vld [vmem:[%s3295_s3 + $0x228] sm:$0xff] }
  0x49   :  { %1583 = vmatpush1.bf16.msra.mxu0 %v1582_v12  ;;  %1609 = vmatprep.subr.bf16.mxu1 %v1608_v56  ;;  %v179_v12 = vld [vmem:[%s3295_s3 + $0xe8] sm:$0xff]  ;;  %v226_v56 = vld [vmem:[%s3295_s3 + $0x260] sm:$0xff]  ;;  %v1624_v57 = vpack.c.bf16 %v227_v50, %v219_v49  ;;  %v292_v49 = vld [vmem:[%s3295_s3 + $0x470] sm:$0xff] }
  0x4a   :  { %1585 = vmatprep.subr.bf16.mxu0 %v1584_v13  ;;  %v173_v13 = vld [vmem:[%s3295_s3 + $0xb8] sm:$0xff]  ;;  %v299_v50 = vld [vmem:[%s3295_s3 + $0x4a8] sm:$0xff] }
  0x4d   :  { %1587 = vmatpush1.bf16.msra.mxu0 %v1586_v18  ;;  %v170_v18 = vld [vmem:[%s3295_s3 + $0xa0] sm:$0xff] }
  0x4e   :  { %1589 = vmatprep.subr.bf16.mxu0 %v1588_v19  ;;  %v178_v19 = vld [vmem:[%s3295_s3 + $0xe0] sm:$0xff] }
  0x4f   :  { %v1614_v29 = vpack.c.bf16 %v178_v19, %v170_v18  ;;  %v250_v19 = vld [vmem:[%s3295_s3 + $0x320] sm:$0xff] }
  0x51   :  { %1591 = vmatpush1.bf16.msra.mxu0 %v1590_v24  ;;  %v1612_v24 = vpack.c.bf16 %v179_v12, %v171_v11  ;;  %v236_v11 = vld [vmem:[%s3295_s3 + $0x2b0] sm:$0xff] }
  0x52   :  { %1593 = vmatprep.subr.bf16.mxu0 %v1592_v25  ;;  %v1676_v25 = vpack.c.bf16 %v181_v14, %v173_v13  ;;  %v244_v12 = vld [vmem:[%s3295_s3 + $0x2f0] sm:$0xff]  ;;  %v251_v13 = vld [vmem:[%s3295_s3 + $0x328] sm:$0xff] }
  0x53   :  { %v259_v14 = vld [vmem:[%s3295_s3 + $0x368] sm:$0xff]  ;;  %v1694_v18 = vpack.c.bf16 %v244_v12, %v236_v11  ;;  %v316_v12 = vld [vmem:[%s3295_s3 + $0x530] sm:$0xff] }
  0x55   :  { %1595 = vmatpush1.bf16.msra.mxu0 %v1594_v30  ;;  %v1678_v30 = vpack.c.bf16 %v180_v22, %v172_v21  ;;  %v258_v21 = vld [vmem:[%s3295_s3 + $0x360] sm:$0xff]  ;;  %v1632_v22 = vpack.c.bf16 %v259_v14, %v251_v13  ;;  %v324_v13 = vld [vmem:[%s3295_s3 + $0x570] sm:$0xff]  ;;  %v331_v14 = vld [vmem:[%s3295_s3 + $0x5a8] sm:$0xff] }
  0x56   :  { %1597 = vmatprep.subr.bf16.mxu0 %v1596_v31  ;;  %v186_v31 = vld [vmem:[%s3295_s3 + $0x120] sm:$0xff] }
  0x57   :  { %v1618_v41 = vpack.c.bf16 %v194_v32, %v186_v31  ;;  %v266_v32 = vld [vmem:[%s3295_s3 + $0x3a0] sm:$0xff] }
  0x59   :  { %1599 = vmatpush1.bf16.msra.mxu0 %v1598_v36  ;;  %v196_v36 = vld [vmem:[%s3295_s3 + $0x170] sm:$0xff] }
  0x5a   :  { %1601 = vmatprep.subr.bf16.mxu0 %v1600_v37  ;;  %v203_v37 = vld [vmem:[%s3295_s3 + $0x1a8] sm:$0xff]  ;;  %v1682_v42 = vpack.c.bf16 %v196_v36, %v188_v35  ;;  %v268_v36 = vld [vmem:[%s3295_s3 + $0x3b0] sm:$0xff] }
  0x5b   :  { %v1620_v45 = vpack.c.bf16 %v211_v38, %v203_v37  ;;  %v276_v37 = vld [vmem:[%s3295_s3 + $0x3f0] sm:$0xff]  ;;  %v283_v38 = vld [vmem:[%s3295_s3 + $0x428] sm:$0xff] }
  0x5c   :  { %v1702_v43 = vpack.c.bf16 %v276_v37, %v268_v36  ;;  %v348_v37 = vld [vmem:[%s3295_s3 + $0x630] sm:$0xff] }
  0x5d   :  { %1603 = vmatpush1.bf16.msra.mxu0 %v1602_v40  ;;  %v213_v40 = vld [vmem:[%s3295_s3 + $0x1f8] sm:$0xff] }
  0x5e   :  { %1605 = vmatprep.subr.bf16.mxu0 %v1604_v48  ;;  %v1684_v46 = vpack.c.bf16 %v213_v40, %v205_v39  ;;  %v212_v48 = vld [vmem:[%s3295_s3 + $0x1f0] sm:$0xff]  ;;  %v291_v39 = vld [vmem:[%s3295_s3 + $0x468] sm:$0xff]  ;;  %v285_v40 = vld [vmem:[%s3295_s3 + $0x438] sm:$0xff] }
  0x5f   :  { %v1686_v54 = vpack.c.bf16 %v212_v48, %v204_v47  ;;  %v284_v48 = vld [vmem:[%s3295_s3 + $0x430] sm:$0xff] }
  0x61   :  { %1607 = vmatpush1.bf16.msra.mxu0 %v1606_v52  ;;  %v229_v52 = vld [vmem:[%s3295_s3 + $0x278] sm:$0xff] }
  0x62   :  { %1673 = vmatprep.subr.bf16.mxu0 %v1672_v58  ;;  %v1688_v58 = vpack.c.bf16 %v229_v52, %v221_v51  ;;  %v307_v51 = vld [vmem:[%s3295_s3 + $0x4e8] sm:$0xff]  ;;  %v301_v52 = vld [vmem:[%s3295_s3 + $0x4b8] sm:$0xff] }
  0xf7   :  { %v143_v2 = vpop.f32.mrb[0].mxu0 }
  0xf8   :  { %v144_v5 = vadd.f32 %v143_v2, %v70_v0  ;;  %v145_v6 = vpop.f32.mrb[1].mxu0  ;;  %v235_v0 = vld [vmem:[%s3295_s3 + $0x2a8] sm:$0xff]  ;;  %v237_v2 = vld [vmem:[%s3295_s3 + $0x2b8] sm:$0xff] }
  0xf9   :  { %v146_v10 = vadd.f32 %v145_v6, %v74_v1  ;;  %v243_v1 = vld [vmem:[%s3295_s3 + $0x2e8] sm:$0xff]  ;;  %v1690_v6 = vpack.c.bf16 %v228_v62, %v220_v59  ;;  %v300_v62 = vld [vmem:[%s3295_s3 + $0x4b0] sm:$0xff] }
  0xfa   :  { %v2481_v20 = vmax.f32 %v144_v5, 0.0  ;;  %v1626_v5 = vpack.c.bf16 %v226_v56, %v218_v55  ;;  %v1628_v9 = vpack.c.bf16 %v243_v1, %v235_v0  ;;  %v1706_v55 = vpack.c.bf16 %v292_v49, %v284_v48  ;;  %v298_v56 = vld [vmem:[%s3295_s3 + $0x4a0] sm:$0xff]  ;;  %v308_v0 = vld [vmem:[%s3295_s3 + $0x4f0] sm:$0xff]  ;;  %v315_v1 = vld [vmem:[%s3295_s3 + $0x528] sm:$0xff] }
  0xfb   :  { %v149_v15 = vmax.f32 %v146_v10, 0.0  ;;  %v1692_v10 = vpack.c.bf16 %v245_v4, %v237_v2  ;;  %v323_v2 = vld [vmem:[%s3295_s3 + $0x568] sm:$0xff]  ;;  %v317_v4 = vld [vmem:[%s3295_s3 + $0x538] sm:$0xff]  ;;  %v364_v49 = vld [vmem:[%s3295_s3 + $0x6b0] sm:$0xff] }
  0xfd   :  { %512 = vmatprep.mubr.f32.mxu1 %v149_v15  ;;  %583 = vmatprep.mubr.f32.mxu0 %v149_v15 }
  0xfe   :  { %513 = vmatmul.mubr.f32.vlgmr.msra.gmra.mrb[0].mxu1 %v2481_v20  ;;  %584 = vmatmul.mubr.f32.vlgmr.msra.gmra.mrb[2].mxu0 %v2481_v20 }
  0xff   :  { %1611 = vmatpush1.bf16.msra.mxu1 %v1610_v16  ;;  %1675 = vmatpush1.bf16.msra.mxu0 %v1674_v17  ;;  %v261_v16 = vld [vmem:[%s3295_s3 + $0x378] sm:$0xff]  ;;  %v1630_v17 = vpack.c.bf16 %v242_v8, %v234_v7  ;;  %v1710_v7 = vpack.c.bf16 %v308_v0, %v300_v62  ;;  %v314_v8 = vld [vmem:[%s3295_s3 + $0x520] sm:$0xff]  ;;  %v380_v0 = vld [vmem:[%s3295_s3 + $0x730] sm:$0xff] }
 0x100   :  { %654 = vmatprep.mubr.f32.mxu1 %v149_v15  ;;  %725 = vmatprep.mubr.f32.mxu0 %v149_v15  ;;  %v253_v15 = vld [vmem:[%s3295_s3 + $0x338] sm:$0xff] }
 0x101   :  { %1613 = vmatprep.subr.bf16.mxu1 %v1612_v24  ;;  %1677 = vmatprep.subr.bf16.mxu0 %v1676_v25  ;;  %v1696_v23 = vpack.c.bf16 %v261_v16, %v253_v15  ;;  %v252_v24 = vld [vmem:[%s3295_s3 + $0x330] sm:$0xff]  ;;  %v339_v15 = vld [vmem:[%s3295_s3 + $0x5e8] sm:$0xff]  ;;  %v333_v16 = vld [vmem:[%s3295_s3 + $0x5b8] sm:$0xff] }
 0x102   :  { %v260_v25 = vld [vmem:[%s3295_s3 + $0x370] sm:$0xff] }
 0x103   :  { %1615 = vmatpush1.bf16.msra.mxu1 %v1614_v29  ;;  %1679 = vmatpush1.bf16.msra.mxu0 %v1678_v30  ;;  %v277_v29 = vld [vmem:[%s3295_s3 + $0x3f8] sm:$0xff]  ;;  %v1634_v30 = vpack.c.bf16 %v258_v21, %v250_v19  ;;  %v1698_v31 = vpack.c.bf16 %v260_v25, %v252_v24  ;;  %v1714_v19 = vpack.c.bf16 %v324_v13, %v316_v12  ;;  %v330_v21 = vld [vmem:[%s3295_s3 + $0x5a0] sm:$0xff]  ;;  %v332_v25 = vld [vmem:[%s3295_s3 + $0x5b0] sm:$0xff] }
 0x104   :  { %1617 = vmatprep.subr.bf16.mxu1 %v1616_v33  ;;  %1681 = vmatprep.subr.bf16.mxu0 %v1680_v34  ;;  %v274_v33 = vld [vmem:[%s3295_s3 + $0x3e0] sm:$0xff]  ;;  %v1636_v34 = vpack.c.bf16 %v275_v27, %v267_v26  ;;  %v1700_v35 = vpack.c.bf16 %v277_v29, %v269_v28  ;;  %v340_v26 = vld [vmem:[%s3295_s3 + $0x5f0] sm:$0xff]  ;;  %v347_v27 = vld [vmem:[%s3295_s3 + $0x628] sm:$0xff] }
 0x105   :  { %v355_v28 = vld [vmem:[%s3295_s3 + $0x668] sm:$0xff]  ;;  %v349_v29 = vld [vmem:[%s3295_s3 + $0x638] sm:$0xff]  ;;  %v396_v13 = vld [vmem:[%s3295_s3 + $0x7b0] sm:$0xff] }
 0x107   :  { %1619 = vmatpush1.bf16.msra.mxu1 %v1618_v41  ;;  %1683 = vmatpush1.bf16.msra.mxu0 %v1682_v42  ;;  %v293_v41 = vld [vmem:[%s3295_s3 + $0x478] sm:$0xff]  ;;  %v1638_v42 = vpack.c.bf16 %v274_v33, %v266_v32  ;;  %v1718_v32 = vpack.c.bf16 %v340_v26, %v332_v25  ;;  %v346_v33 = vld [vmem:[%s3295_s3 + $0x620] sm:$0xff] }
 0x108   :  { %1621 = vmatprep.subr.bf16.mxu1 %v1620_v45  ;;  %1685 = vmatprep.subr.bf16.mxu0 %v1684_v46  ;;  %v290_v45 = vld [vmem:[%s3295_s3 + $0x460] sm:$0xff]  ;;  %v1640_v46 = vpack.c.bf16 %v291_v39, %v283_v38  ;;  %v1704_v47 = vpack.c.bf16 %v293_v41, %v285_v40  ;;  %v356_v38 = vld [vmem:[%s3295_s3 + $0x670] sm:$0xff]  ;;  %v363_v39 = vld [vmem:[%s3295_s3 + $0x6a8] sm:$0xff] }
 0x109   :  { %v371_v40 = vld [vmem:[%s3295_s3 + $0x6e8] sm:$0xff]  ;;  %v365_v41 = vld [vmem:[%s3295_s3 + $0x6b8] sm:$0xff]  ;;  %v772_v26 = vld [vmem:[%s3298_s5 + $0x100] sm:$0xff] }
 0x10b   :  { %1623 = vmatpush1.bf16.msra.mxu1 %v1622_v53  ;;  %1687 = vmatpush1.bf16.msra.mxu0 %v1686_v54  ;;  %v309_v53 = vld [vmem:[%s3295_s3 + $0x4f8] sm:$0xff]  ;;  %v1642_v54 = vpack.c.bf16 %v290_v45, %v282_v44  ;;  %v1722_v44 = vpack.c.bf16 %v356_v38, %v348_v37  ;;  %v362_v45 = vld [vmem:[%s3295_s3 + $0x6a0] sm:$0xff]  ;;  %v774_v38 = vld [vmem:[%s3298_s5 + $0x110] sm:$0xff] }
 0x10c   :  { %1625 = vmatprep.subr.bf16.mxu1 %v1624_v57  ;;  %1689 = vmatprep.subr.bf16.mxu0 %v1688_v58  ;;  %v306_v57 = vld [vmem:[%s3295_s3 + $0x4e0] sm:$0xff]  ;;  %v1644_v58 = vpack.c.bf16 %v307_v51, %v299_v50  ;;  %v1708_v59 = vpack.c.bf16 %v309_v53, %v301_v52  ;;  %v372_v50 = vld [vmem:[%s3295_s3 + $0x6f0] sm:$0xff]  ;;  %v379_v51 = vld [vmem:[%s3295_s3 + $0x728] sm:$0xff] }
 0x10d   :  { %v387_v52 = vld [vmem:[%s3295_s3 + $0x768] sm:$0xff]  ;;  %v381_v53 = vld [vmem:[%s3295_s3 + $0x738] sm:$0xff] }
 0x10f   :  { %1627 = vmatpush1.bf16.msra.mxu1 %v1626_v5  ;;  %1691 = vmatpush1.bf16.msra.mxu0 %v1690_v6  ;;  %v325_v5 = vld [vmem:[%s3295_s3 + $0x578] sm:$0xff]  ;;  %v1646_v6 = vpack.c.bf16 %v306_v57, %v298_v56  ;;  %v1726_v56 = vpack.c.bf16 %v372_v50, %v364_v49  ;;  %v378_v57 = vld [vmem:[%s3295_s3 + $0x720] sm:$0xff]  ;;  %v777_v50 = vld [vmem:[%s3298_s5 + $0x128] sm:$0xff] }
 0x110   :  { %1629 = vmatprep.subr.bf16.mxu1 %v1628_v9  ;;  %1693 = vmatprep.subr.bf16.mxu0 %v1692_v10  ;;  %v322_v9 = vld [vmem:[%s3295_s3 + $0x560] sm:$0xff]  ;;  %v1648_v10 = vpack.c.bf16 %v323_v2, %v315_v1  ;;  %v1712_v11 = vpack.c.bf16 %v325_v5, %v317_v4  ;;  %v388_v1 = vld [vmem:[%s3295_s3 + $0x770] sm:$0xff]  ;;  %v395_v2 = vld [vmem:[%s3295_s3 + $0x7a8] sm:$0xff] }
 0x111   :  { %v403_v4 = vld [vmem:[%s3295_s3 + $0x7e8] sm:$0xff]  ;;  %v397_v5 = vld [vmem:[%s3295_s3 + $0x7b8] sm:$0xff] }
 0x113   :  { %1631 = vmatpush1.bf16.msra.mxu1 %v1630_v17  ;;  %1695 = vmatpush1.bf16.msra.mxu0 %v1694_v18  ;;  %v341_v17 = vld [vmem:[%s3295_s3 + $0x5f8] sm:$0xff]  ;;  %v1650_v18 = vpack.c.bf16 %v322_v9, %v314_v8  ;;  %v1730_v8 = vpack.c.bf16 %v388_v1, %v380_v0  ;;  %v394_v9 = vld [vmem:[%s3295_s3 + $0x7a0] sm:$0xff]  ;;  %v778_v0 = vld [vmem:[%s3298_s5 + $0x130] sm:$0xff] }
 0x114   :  { %1633 = vmatprep.subr.bf16.mxu1 %v1632_v22  ;;  %1697 = vmatprep.subr.bf16.mxu0 %v1696_v23  ;;  %v338_v22 = vld [vmem:[%s3295_s3 + $0x5e0] sm:$0xff]  ;;  %v1652_v23 = vpack.c.bf16 %v339_v15, %v331_v14  ;;  %v1716_v24 = vpack.c.bf16 %v341_v17, %v333_v16  ;;  %v404_v14 = vld [vmem:[%s3295_s3 + $0x7f0] sm:$0xff]  ;;  %v757_v16 = vld [vmem:[%s3298_s5 + $0x88] sm:$0xff] }
 0x115   :  { %v756_v15 = vld [vmem:[%s3298_s5 + $0x80] sm:$0xff]  ;;  %v779_v1 = vld [vmem:[%s3298_s5 + $0x138] sm:$0xff] }
 0x116   :  { %v788_v17 = vld [vmem:[%s3298_s5 + $0x180] sm:$0xff] }
 0x117   :  { %1635 = vmatpush1.bf16.msra.mxu1 %v1634_v30  ;;  %1699 = vmatpush1.bf16.msra.mxu0 %v1698_v31  ;;  %v357_v30 = vld [vmem:[%s3295_s3 + $0x678] sm:$0xff]  ;;  %v1654_v31 = vpack.c.bf16 %v338_v22, %v330_v21  ;;  %v1734_v21 = vpack.c.bf16 %v404_v14, %v396_v13  ;;  %v740_v22 = vld [vmem:[%s3298_s5] sm:$0xff]  ;;  %v781_v14 = vld [vmem:[%s3298_s5 + $0x148] sm:$0xff] }
 0x118   :  { %1637 = vmatprep.subr.bf16.mxu1 %v1636_v34  ;;  %1701 = vmatprep.subr.bf16.mxu0 %v1700_v35  ;;  %v354_v34 = vld [vmem:[%s3295_s3 + $0x660] sm:$0xff]  ;;  %v1656_v35 = vpack.c.bf16 %v355_v28, %v347_v27  ;;  %v1720_v36 = vpack.c.bf16 %v357_v30, %v349_v29  ;;  %v773_v27 = vld [vmem:[%s3298_s5 + $0x108] sm:$0xff]  ;;  %v758_v28 = vld [vmem:[%s3298_s5 + $0x90] sm:$0xff] }
 0x119   :  { %v759_v29 = vld [vmem:[%s3298_s5 + $0x98] sm:$0xff]  ;;  %v790_v30 = vld [vmem:[%s3298_s5 + $0x190] sm:$0xff]  ;;  %v780_v13 = vld [vmem:[%s3298_s5 + $0x140] sm:$0xff] }
 0x11b   :  { %1639 = vmatpush1.bf16.msra.mxu1 %v1638_v42  ;;  %1703 = vmatpush1.bf16.msra.mxu0 %v1702_v43  ;;  %v373_v42 = vld [vmem:[%s3295_s3 + $0x6f8] sm:$0xff]  ;;  %v1658_v43 = vpack.c.bf16 %v354_v34, %v346_v33  ;;  %v1770_v33 = vpack.c.bf16 %v773_v27, %v772_v26  ;;  %v742_v34 = vld [vmem:[%s3298_s5 + $0x10] sm:$0xff] }
 0x11c   :  { %1641 = vmatprep.subr.bf16.mxu1 %v1640_v46  ;;  %1705 = vmatprep.subr.bf16.mxu0 %v1704_v47  ;;  %v370_v46 = vld [vmem:[%s3295_s3 + $0x6e0] sm:$0xff]  ;;  %v1660_v47 = vpack.c.bf16 %v371_v40, %v363_v39  ;;  %v1724_v48 = vpack.c.bf16 %v373_v42, %v365_v41  ;;  %v775_v39 = vld [vmem:[%s3298_s5 + $0x118] sm:$0xff]  ;;  %v761_v41 = vld [vmem:[%s3298_s5 + $0xa8] sm:$0xff] }
 0x11d   :  { %v760_v40 = vld [vmem:[%s3298_s5 + $0xa0] sm:$0xff]  ;;  %v782_v26 = vld [vmem:[%s3298_s5 + $0x150] sm:$0xff]  ;;  %v783_v27 = vld [vmem:[%s3298_s5 + $0x158] sm:$0xff] }
 0x11e   :  { %v792_v42 = vld [vmem:[%s3298_s5 + $0x1a0] sm:$0xff] }
 0x11f   :  { %1643 = vmatpush1.bf16.msra.mxu1 %v1642_v54  ;;  %1707 = vmatpush1.bf16.msra.mxu0 %v1706_v55  ;;  %v389_v54 = vld [vmem:[%s3295_s3 + $0x778] sm:$0xff]  ;;  %v1662_v55 = vpack.c.bf16 %v370_v46, %v362_v45  ;;  %v1774_v45 = vpack.c.bf16 %v775_v39, %v774_v38  ;;  %v744_v46 = vld [vmem:[%s3298_s5 + $0x20] sm:$0xff]  ;;  %v785_v39 = vld [vmem:[%s3298_s5 + $0x168] sm:$0xff] }
 0x120   :  { %1645 = vmatprep.subr.bf16.mxu1 %v1644_v58  ;;  %1709 = vmatprep.subr.bf16.mxu0 %v1708_v59  ;;  %v386_v58 = vld [vmem:[%s3295_s3 + $0x760] sm:$0xff]  ;;  %v1664_v59 = vpack.c.bf16 %v387_v52, %v379_v51  ;;  %v1728_v62 = vpack.c.bf16 %v389_v54, %v381_v53  ;;  %v762_v51 = vld [vmem:[%s3298_s5 + $0xb0] sm:$0xff]  ;;  %v763_v52 = vld [vmem:[%s3298_s5 + $0xb8] sm:$0xff] }
 0x121   :  { %v794_v53 = vld [vmem:[%s3298_s5 + $0x1b0] sm:$0xff]  ;;  %v795_v54 = vld [vmem:[%s3298_s5 + $0x1b8] sm:$0xff]  ;;  %v784_v38 = vld [vmem:[%s3298_s5 + $0x160] sm:$0xff] }
 0x123   :  { %1647 = vmatpush1.bf16.msra.mxu1 %v1646_v6  ;;  %1711 = vmatpush1.bf16.msra.mxu0 %v1710_v7  ;;  %v405_v6 = vld [vmem:[%s3295_s3 + $0x7f8] sm:$0xff]  ;;  %v1666_v7 = vpack.c.bf16 %v386_v58, %v378_v57  ;;  %v746_v57 = vld [vmem:[%s3298_s5 + $0x30] sm:$0xff] }
 0x124   :  { %1649 = vmatprep.subr.bf16.mxu1 %v1648_v10  ;;  %1713 = vmatprep.subr.bf16.mxu0 %v1712_v11  ;;  %v402_v10 = vld [vmem:[%s3295_s3 + $0x7e0] sm:$0xff]  ;;  %v1668_v11 = vpack.c.bf16 %v403_v4, %v395_v2  ;;  %v1732_v12 = vpack.c.bf16 %v405_v6, %v397_v5  ;;  %v747_v58 = vld [vmem:[%s3298_s5 + $0x38] sm:$0xff]  ;;  %v765_v4 = vld [vmem:[%s3298_s5 + $0xc8] sm:$0xff] }
 0x125   :  { %v764_v2 = vld [vmem:[%s3298_s5 + $0xc0] sm:$0xff]  ;;  %v797_v6 = vld [vmem:[%s3298_s5 + $0x1c8] sm:$0xff] }
 0x126   :  { %v796_v5 = vld [vmem:[%s3298_s5 + $0x1c0] sm:$0xff] }
 0x127   :  { %1651 = vmatpush1.bf16.msra.mxu1 %v1650_v18  ;;  %1715 = vmatpush1.bf16.msra.mxu0 %v1714_v19  ;;  %v789_v18 = vld [vmem:[%s3298_s5 + $0x188] sm:$0xff]  ;;  %v1670_v19 = vpack.c.bf16 %v402_v10, %v394_v9  ;;  %v748_v9 = vld [vmem:[%s3298_s5 + $0x40] sm:$0xff] }
 0x128   :  { %1653 = vmatprep.subr.bf16.mxu1 %v1652_v23  ;;  %1717 = vmatprep.subr.bf16.mxu0 %v1716_v24  ;;  %v741_v23 = vld [vmem:[%s3298_s5 + $0x8] sm:$0xff]  ;;  %v1736_v24 = vpack.c.bf16 %v757_v16, %v756_v15  ;;  %v1768_v25 = vpack.c.bf16 %v789_v18, %v788_v17  ;;  %v766_v15 = vld [vmem:[%s3298_s5 + $0xd0] sm:$0xff]  ;;  %v767_v16 = vld [vmem:[%s3298_s5 + $0xd8] sm:$0xff] }
 0x129   :  { %v749_v10 = vld [vmem:[%s3298_s5 + $0x48] sm:$0xff]  ;;  %v798_v17 = vld [vmem:[%s3298_s5 + $0x1d0] sm:$0xff]  ;;  %v799_v18 = vld [vmem:[%s3298_s5 + $0x1d8] sm:$0xff] }
 0x12b   :  { %1655 = vmatpush1.bf16.msra.mxu1 %v1654_v31  ;;  %1719 = vmatpush1.bf16.msra.mxu0 %v1718_v32  ;;  %v791_v31 = vld [vmem:[%s3298_s5 + $0x198] sm:$0xff]  ;;  %v1738_v32 = vpack.c.bf16 %v741_v23, %v740_v22  ;;  %v750_v22 = vld [vmem:[%s3298_s5 + $0x50] sm:$0xff] }
 0x12c   :  { %1657 = vmatprep.subr.bf16.mxu1 %v1656_v35  ;;  %1721 = vmatprep.subr.bf16.mxu0 %v1720_v36  ;;  %v743_v35 = vld [vmem:[%s3298_s5 + $0x18] sm:$0xff]  ;;  %v1740_v36 = vpack.c.bf16 %v759_v29, %v758_v28  ;;  %v1772_v37 = vpack.c.bf16 %v791_v31, %v790_v30  ;;  %v768_v28 = vld [vmem:[%s3298_s5 + $0xe0] sm:$0xff]  ;;  %v769_v29 = vld [vmem:[%s3298_s5 + $0xe8] sm:$0xff] }
 0x12d   :  { %v751_v23 = vld [vmem:[%s3298_s5 + $0x58] sm:$0xff]  ;;  %v800_v30 = vld [vmem:[%s3298_s5 + $0x1e0] sm:$0xff]  ;;  %v801_v31 = vld [vmem:[%s3298_s5 + $0x1e8] sm:$0xff] }
 0x12f   :  { %1659 = vmatpush1.bf16.msra.mxu1 %v1658_v43  ;;  %1723 = vmatpush1.bf16.msra.mxu0 %v1722_v44  ;;  %v793_v43 = vld [vmem:[%s3298_s5 + $0x1a8] sm:$0xff]  ;;  %v1742_v44 = vpack.c.bf16 %v743_v35, %v742_v34  ;;  %v752_v34 = vld [vmem:[%s3298_s5 + $0x60] sm:$0xff]  ;;  %v1760_v35 = vpack.c.bf16 %v769_v29, %v768_v28 }
 0x130   :  { %1661 = vmatprep.subr.bf16.mxu1 %v1660_v47  ;;  %1725 = vmatprep.subr.bf16.mxu0 %v1724_v48  ;;  %v745_v47 = vld [vmem:[%s3298_s5 + $0x28] sm:$0xff]  ;;  %v1744_v48 = vpack.c.bf16 %v761_v41, %v760_v40  ;;  %v1776_v49 = vpack.c.bf16 %v793_v43, %v792_v42  ;;  %v770_v40 = vld [vmem:[%s3298_s5 + $0xf0] sm:$0xff]  ;;  %v771_v41 = vld [vmem:[%s3298_s5 + $0xf8] sm:$0xff] }
 0x131   :  { %v802_v42 = vld [vmem:[%s3298_s5 + $0x1f0] sm:$0xff] }
 0x133   :  { %1663 = vmatpush1.bf16.msra.mxu1 %v1662_v55  ;;  %1727 = vmatpush1.bf16.msra.mxu0 %v1726_v56  ;;  %v1746_v55 = vpack.c.bf16 %v745_v47, %v744_v46  ;;  %v754_v46 = vld [vmem:[%s3298_s5 + $0x70] sm:$0xff]  ;;  %v1764_v47 = vpack.c.bf16 %v771_v41, %v770_v40  ;;  %v809_v40 = vld [vmem:[%s3298_s5 + $0x228] sm:$0xff] }
 0x134   :  { %1665 = vmatprep.subr.bf16.mxu1 %v1664_v59  ;;  %1729 = vmatprep.subr.bf16.mxu0 %v1728_v62  ;;  %v1748_v59 = vpack.c.bf16 %v763_v52, %v762_v51  ;;  %v1780_v62 = vpack.c.bf16 %v795_v54, %v794_v53  ;;  %v820_v53 = vld [vmem:[%s3298_s5 + $0x280] sm:$0xff]  ;;  %v821_v54 = vld [vmem:[%s3298_s5 + $0x288] sm:$0xff] }
 0x137   :  { %1667 = vmatpush1.bf16.msra.mxu1 %v1666_v7  ;;  %1731 = vmatpush1.bf16.msra.mxu0 %v1730_v8  ;;  %v1750_v7 = vpack.c.bf16 %v747_v58, %v746_v57  ;;  %v1782_v8 = vpack.c.bf16 %v779_v1, %v778_v0  ;;  %v853_v57 = vld [vmem:[%s3298_s5 + $0x388] sm:$0xff]  ;;  %v422_v0 = vsub.s32 3, %v2440_v60 }
 0x138   :  { %1669 = vmatprep.subr.bf16.mxu1 %v1668_v11  ;;  %1733 = vmatprep.subr.bf16.mxu0 %v1732_v12  ;;  %v1752_v11 = vpack.c.bf16 %v765_v4, %v764_v2  ;;  %v1784_v12 = vpack.c.bf16 %v797_v6, %v796_v5 }
 0x13b   :  { %1671 = vmatpush1.bf16.msra.mxu1 %v1670_v19  ;;  %1735 = vmatpush1.bf16.msra.mxu0 %v1734_v21  ;;  %v1754_v19 = vpack.c.bf16 %v749_v10, %v748_v9  ;;  %v1786_v21 = vpack.c.bf16 %v781_v14, %v780_v13  ;;  %v805_v9 = vld [vmem:[%s3298_s5 + $0x208] sm:$0xff]  ;;  %v822_v14 = vld [vmem:[%s3298_s5 + $0x290] sm:$0xff] }
 0x13c   :  { %1737 = vmatprep.subr.bf16.mxu1 %v1736_v24  ;;  %1769 = vmatprep.subr.bf16.mxu0 %v1768_v25  ;;  %v1756_v24 = vpack.c.bf16 %v767_v16, %v766_v15  ;;  %v1788_v25 = vpack.c.bf16 %v799_v18, %v798_v17  ;;  %v837_v13 = vld [vmem:[%s3298_s5 + $0x308] sm:$0xff]  ;;  %v823_v17 = vld [vmem:[%s3298_s5 + $0x298] sm:$0xff]  ;;  %v854_v18 = vld [vmem:[%s3298_s5 + $0x390] sm:$0xff] }
 0x13d   :  { %v1804_v29 = vpack.c.bf16 %v823_v17, %v822_v14  ;;  %v815_v14 = vld [vmem:[%s3298_s5 + $0x258] sm:$0xff]  ;;  %v846_v17 = vld [vmem:[%s3298_s5 + $0x350] sm:$0xff] }
 0x13e   :  { %655 = vmatmul.mubr.f32.vlgmr.msra.gmra.mrb[2].mxu1 %v2481_v20  ;;  %726 = vmatmul.mubr.f32.vlgmr.msra.gmra.mrb[4].mxu0 %v2481_v20  ;;  %v776_v20 = vld [vmem:[%s3298_s5 + $0x120] sm:$0xff] }
 0x13f   :  { %1739 = vmatpush3.bf16.msra.mxu1 %v1738_v32  ;;  %1771 = vmatpush3.bf16.msra.mxu0 %v1770_v33  ;;  %v1778_v56 = vpack.c.bf16 %v777_v50, %v776_v20  ;;  %v1758_v32 = vpack.c.bf16 %v751_v23, %v750_v22  ;;  %v1790_v33 = vpack.c.bf16 %v783_v27, %v782_v26  ;;  %v786_v20 = vld [vmem:[%s3298_s5 + $0x170] sm:$0xff]  ;;  %v787_v50 = vld [vmem:[%s3298_s5 + $0x178] sm:$0xff] }
 0x140   :  { %1741 = vmatprep.subr.bf16.mxu1 %v1740_v36  ;;  %1773 = vmatprep.subr.bf16.mxu0 %v1772_v37  ;;  %v1792_v36 = vpack.c.bf16 %v801_v31, %v800_v30  ;;  %v753_v37 = vld [vmem:[%s3298_s5 + $0x68] sm:$0xff]  ;;  %v1798_v52 = vpack.c.bf16 %v787_v50, %v786_v20  ;;  %v807_v26 = vld [vmem:[%s3298_s5 + $0x218] sm:$0xff]  ;;  %v838_v31 = vld [vmem:[%s3298_s5 + $0x310] sm:$0xff] }
 0x141   :  { %v1762_v43 = vpack.c.bf16 %v753_v37, %v752_v34  ;;  %v825_v34 = vld [vmem:[%s3298_s5 + $0x2a8] sm:$0xff]  ;;  %v810_v50 = vld [vmem:[%s3298_s5 + $0x230] sm:$0xff] }
 0x143   :  { %1743 = vmatpush3.bf16.msra.mxu1 %v1742_v44  ;;  %1775 = vmatpush3.bf16.msra.mxu0 %v1774_v45  ;;  %v1794_v44 = vpack.c.bf16 %v785_v39, %v784_v38  ;;  %v803_v45 = vld [vmem:[%s3298_s5 + $0x1f8] sm:$0xff]  ;;  %v808_v39 = vld [vmem:[%s3298_s5 + $0x220] sm:$0xff] }
 0x144   :  { %1745 = vmatprep.subr.bf16.mxu1 %v1744_v48  ;;  %1777 = vmatprep.subr.bf16.mxu0 %v1776_v49  ;;  %v1796_v48 = vpack.c.bf16 %v803_v45, %v802_v42  ;;  %v755_v49 = vld [vmem:[%s3298_s5 + $0x78] sm:$0xff]  ;;  %v826_v45 = vld [vmem:[%s3298_s5 + $0x2b0] sm:$0xff] }
 0x145   :  { %v1766_v51 = vpack.c.bf16 %v755_v49, %v754_v46  ;;  %v827_v46 = vld [vmem:[%s3298_s5 + $0x2b8] sm:$0xff]  ;;  %v1810_v49 = vpack.c.bf16 %v809_v40, %v808_v39 }
 0x147   :  { %1747 = vmatpush3.bf16.msra.mxu1 %v1746_v55  ;;  %1779 = vmatpush3.bf16.msra.mxu0 %v1778_v56  ;;  %v852_v55 = vld [vmem:[%s3298_s5 + $0x380] sm:$0xff]  ;;  %v1800_v56 = vpack.c.bf16 %v821_v54, %v820_v53  ;;  %v842_v54 = vld [vmem:[%s3298_s5 + $0x330] sm:$0xff] }
 0x148   :  { %1749 = vmatprep.subr.bf16.mxu1 %v1748_v59  ;;  %1781 = vmatprep.subr.bf16.mxu0 %v1780_v62  ;;  %v1832_v58 = vpack.c.bf16 %v853_v57, %v852_v55  ;;  %v418_v59 = vsub.s32 2, %v2440_v60  ;;  %v3037_v62 = vld [vmem:[%s3299_s4] sm:$0xff]  ;;  %v843_v55 = vld [vmem:[%s3298_s5 + $0x338] sm:$0xff]  ;;  %v829_v57 = vld [vmem:[%s3298_s5 + $0x2c8] sm:$0xff] }
 0x149   :  { %v411_v1 = vrot.slane %v3037_v62, %v69_v61  ;;  %v415_v4 = vrot.slane %v3037_v62, %v73_v63  ;;  %v423_v5 = vrot.slane %v3037_v62, %v422_v0  ;;  %v836_v63 = vld [vmem:[%s3298_s5 + $0x300] sm:$0xff] }
 0x14a   :  { %v419_v2 = vrot.slane %v3037_v62, %v418_v59  ;;  %v861_v59 = vld [vmem:[%s3298_s5 + $0x3c8] sm:$0xff] }
 0x14b   :  { %1751 = vmatpush3.bf16.msra.mxu1 %v1750_v7  ;;  %1783 = vmatpush3.bf16.msra.mxu0 %v1782_v8  ;;  %v804_v8 = vld [vmem:[%s3298_s5 + $0x200] sm:$0xff] }
 0x14c   :  { %1753 = vmatprep.subr.bf16.mxu1 %v1752_v11  ;;  %1785 = vmatprep.subr.bf16.mxu0 %v1784_v12  ;;  %v1802_v23 = vpack.c.bf16 %v805_v9, %v804_v8  ;;  %v845_v8 = vld [vmem:[%s3298_s5 + $0x348] sm:$0xff]  ;;  %v830_v9 = vld [vmem:[%s3298_s5 + $0x2d0] sm:$0xff] }
 0x14f   :  { %1755 = vmatpush3.bf16.msra.mxu1 %v1754_v19  ;;  %1787 = vmatpush3.bf16.msra.mxu0 %v1786_v21  ;;  %v855_v19 = vld [vmem:[%s3298_s5 + $0x398] sm:$0xff] }
 0x150   :  { %1757 = vmatprep.subr.bf16.mxu1 %v1756_v24  ;;  %1789 = vmatprep.subr.bf16.mxu0 %v1788_v25  ;;  %v1834_v24 = vpack.c.bf16 %v837_v13, %v836_v63  ;;  %v806_v25 = vld [vmem:[%s3298_s5 + $0x210] sm:$0xff]  ;;  %v1836_v30 = vpack.c.bf16 %v855_v19, %v854_v18  ;;  %v847_v18 = vld [vmem:[%s3298_s5 + $0x358] sm:$0xff]  ;;  %v832_v19 = vld [vmem:[%s3298_s5 + $0x2e0] sm:$0xff] }
 0x151   :  { %v1806_v37 = vpack.c.bf16 %v807_v26, %v806_v25  ;;  %v814_v13 = vld [vmem:[%s3298_s5 + $0x250] sm:$0xff]  ;;  %v1854_v25 = vpack.c.bf16 %v847_v18, %v846_v17  ;;  %v816_v26 = vld [vmem:[%s3298_s5 + $0x260] sm:$0xff] }
 0x152   :  { %v1166_v18 = vld [vmem:[%s3300_s7 + $0x50] sm:$0xff] }
 0x153   :  { %1759 = vmatpush3.bf16.msra.mxu1 %v1758_v32  ;;  %1791 = vmatpush3.bf16.msra.mxu0 %v1790_v33  ;;  %v839_v32 = vld [vmem:[%s3298_s5 + $0x318] sm:$0xff]  ;;  %v824_v33 = vld [vmem:[%s3298_s5 + $0x2a0] sm:$0xff] }
 0x154   :  { %1761 = vmatprep.subr.bf16.mxu1 %v1760_v35  ;;  %1793 = vmatprep.subr.bf16.mxu0 %v1792_v36  ;;  %v856_v35 = vld [vmem:[%s3298_s5 + $0x3a0] sm:$0xff]  ;;  %v857_v36 = vld [vmem:[%s3298_s5 + $0x3a8] sm:$0xff]  ;;  %v1838_v38 = vpack.c.bf16 %v839_v32, %v838_v31  ;;  %v1808_v41 = vpack.c.bf16 %v825_v34, %v824_v33  ;;  %v834_v32 = vld [vmem:[%s3298_s5 + $0x2f0] sm:$0xff] }
 0x155   :  { %v1840_v42 = vpack.c.bf16 %v857_v36, %v856_v35  ;;  %v849_v31 = vld [vmem:[%s3298_s5 + $0x368] sm:$0xff]  ;;  %v835_v33 = vld [vmem:[%s3298_s5 + $0x2f8] sm:$0xff]  ;;  %v866_v34 = vld [vmem:[%s3298_s5 + $0x3f0] sm:$0xff] }
 0x156   :  { %v867_v35 = vld [vmem:[%s3298_s5 + $0x3f8] sm:$0xff]  ;;  %v1828_v39 = vpack.c.bf16 %v835_v33, %v834_v32 }
 0x157   :  { %1763 = vmatpush3.bf16.msra.mxu1 %v1762_v43  ;;  %1795 = vmatpush3.bf16.msra.mxu0 %v1794_v44  ;;  %v840_v43 = vld [vmem:[%s3298_s5 + $0x320] sm:$0xff]  ;;  %v841_v44 = vld [vmem:[%s3298_s5 + $0x328] sm:$0xff]  ;;  %v1860_v40 = vpack.c.bf16 %v867_v35, %v866_v34 }
 0x158   :  { %1765 = vmatprep.subr.bf16.mxu1 %v1764_v47  ;;  %1797 = vmatprep.subr.bf16.mxu0 %v1796_v48  ;;  %v858_v47 = vld [vmem:[%s3298_s5 + $0x3b0] sm:$0xff]  ;;  %v859_v48 = vld [vmem:[%s3298_s5 + $0x3b8] sm:$0xff]  ;;  %v1842_v20 = vpack.c.bf16 %v841_v44, %v840_v43 }
 0x159   :  { %v1844_v53 = vpack.c.bf16 %v859_v48, %v858_v47  ;;  %v851_v43 = vld [vmem:[%s3298_s5 + $0x378] sm:$0xff]  ;;  %v434_v47 = vsub.s32 6, %v2440_v60  ;;  %v430_v48 = vsub.s32 5, %v2440_v60 }
 0x15b   :  { %1767 = vmatpush3.bf16.msra.mxu1 %v1766_v51  ;;  %1799 = vmatpush3.bf16.msra.mxu0 %v1798_v52  ;;  %v811_v51 = vld [vmem:[%s3298_s5 + $0x238] sm:$0xff]  ;;  %v1812_v52 = vpack.c.bf16 %v827_v46, %v826_v45  ;;  %v426_v46 = vsub.s32 4, %v2440_v60 }
 0x15c   :  { %1801 = vmatprep.subr.bf16.mxu1 %v1800_v56  ;;  %1833 = vmatprep.subr.bf16.mxu0 %v1832_v58  ;;  %v828_v56 = vld [vmem:[%s3298_s5 + $0x2c0] sm:$0xff]  ;;  %v1814_v0 = vpack.c.bf16 %v811_v51, %v810_v50  ;;  %v435_v50 = vrot.slane %v3037_v62, %v434_v47  ;;  %v431_v51 = vrot.slane %v3037_v62, %v430_v48 }
 0x15d   :  { %v860_v58 = vld [vmem:[%s3298_s5 + $0x3c0] sm:$0xff] }
 0x1d1   :  { %v514_v6 = vpop.f32.mrb[0].mxu1  ;;  %v585_v7 = vpop.f32.mrb[2].mxu0 }
 0x1d2   :  { %v515_v10 = vadd.f32 %v514_v6, %v411_v1  ;;  %v586_v61 = vadd.f32 %v585_v7, %v419_v2  ;;  %v516_v11 = vpop.f32.mrb[1].mxu1  ;;  %v587_v12 = vpop.f32.mrb[3].mxu0  ;;  %v1846_v1 = vpack.c.bf16 %v843_v55, %v842_v54  ;;  %v812_v2 = vld [vmem:[%s3298_s5 + $0x240] sm:$0xff]  ;;  %v1848_v6 = vpack.c.bf16 %v861_v59, %v860_v58 }
 0x1d3   :  { %v517_v15 = vadd.f32 %v516_v11, %v415_v4  ;;  %v588_v16 = vadd.f32 %v587_v12, %v423_v5  ;;  %v813_v4 = vld [vmem:[%s3298_s5 + $0x248] sm:$0xff]  ;;  %v1816_v5 = vpack.c.bf16 %v829_v57, %v828_v56  ;;  %v844_v7 = vld [vmem:[%s3298_s5 + $0x340] sm:$0xff]  ;;  %v863_v11 = vld [vmem:[%s3298_s5 + $0x3d8] sm:$0xff] }
 0x1d4   :  { %v732_v27 = vmax.f32 %v515_v10, 0.0  ;;  %v734_v28 = vmax.f32 %v586_v61, 0.0  ;;  %v831_v10 = vld [vmem:[%s3298_s5 + $0x2d8] sm:$0xff]  ;;  %v862_v61 = vld [vmem:[%s3298_s5 + $0x3d0] sm:$0xff]  ;;  %v1818_v12 = vpack.c.bf16 %v813_v4, %v812_v2  ;;  %v1850_v63 = vpack.c.bf16 %v845_v8, %v844_v7 }
 0x1d5   :  { %v733_v21 = vmax.f32 %v517_v15, 0.0  ;;  %v735_v22 = vmax.f32 %v588_v16, 0.0  ;;  %v1820_v15 = vpack.c.bf16 %v831_v10, %v830_v9  ;;  %v1852_v16 = vpack.c.bf16 %v863_v11, %v862_v61  ;;  %v1158_v7 = vld [vmem:[%s3300_s7 + $0x10] sm:$0xff]  ;;  %v1159_v9 = vld [vmem:[%s3300_s7 + $0x18] sm:$0xff]  ;;  %v1160_v61 = vld [vmem:[%s3300_s7 + $0x20] sm:$0xff] }
 0x1d6   :  { %v1868_v10 = vpack.c.bf16 %v1159_v9, %v1158_v7  ;;  %v1161_v11 = vld [vmem:[%s3300_s7 + $0x28] sm:$0xff] }
 0x1d7   :  { %939 = vmatprep.mubr.f32.mxu1 %v733_v21  ;;  %1009 = vmatprep.mubr.f32.mxu0 %v735_v22  ;;  %v833_v21 = vld [vmem:[%s3298_s5 + $0x2e8] sm:$0xff]  ;;  %v864_v22 = vld [vmem:[%s3298_s5 + $0x3e0] sm:$0xff] }
 0x1d8   :  { %940 = vmatmul.mubr.f32.vlgmr.msra.gmra.mrb[4].mxu1 %v732_v27  ;;  %1010 = vmatmul.mubr.f32.vlgmr.msra.gmra.mrb[6].mxu0 %v734_v28  ;;  %v817_v27 = vld [vmem:[%s3298_s5 + $0x268] sm:$0xff]  ;;  %v1824_v28 = vpack.c.bf16 %v833_v21, %v832_v19  ;;  %v1167_v19 = vld [vmem:[%s3300_s7 + $0x58] sm:$0xff] }
 0x1d9   :  { %1803 = vmatpush3.bf16.msra.mxu1 %v1802_v23  ;;  %1835 = vmatpush3.bf16.msra.mxu0 %v1834_v24  ;;  %v865_v23 = vld [vmem:[%s3298_s5 + $0x3e8] sm:$0xff]  ;;  %v1822_v24 = vpack.c.bf16 %v815_v14, %v814_v13  ;;  %v1826_v36 = vpack.c.bf16 %v817_v27, %v816_v26  ;;  %v1163_v13 = vld [vmem:[%s3300_s7 + $0x38] sm:$0xff]  ;;  %v1880_v21 = vpack.c.bf16 %v1167_v19, %v1166_v18 }
 0x1da   :  { %1805 = vmatprep.subr.bf16.mxu1 %v1804_v29  ;;  %1837 = vmatprep.subr.bf16.mxu0 %v1836_v30  ;;  %v1856_v29 = vpack.c.bf16 %v865_v23, %v864_v22  ;;  %v848_v30 = vld [vmem:[%s3298_s5 + $0x360] sm:$0xff]  ;;  %v1169_v23 = vld [vmem:[%s3300_s7 + $0x68] sm:$0xff]  ;;  %v1171_v26 = vld [vmem:[%s3300_s7 + $0x78] sm:$0xff] }
 0x1db   :  { %v1168_v22 = vld [vmem:[%s3300_s7 + $0x60] sm:$0xff] }
 0x1dd   :  { %1807 = vmatpush3.bf16.msra.mxu1 %v1806_v37  ;;  %1839 = vmatpush3.bf16.msra.mxu0 %v1838_v38  ;;  %v1858_v37 = vpack.c.bf16 %v849_v31, %v848_v30  ;;  %v818_v38 = vld [vmem:[%s3298_s5 + $0x270] sm:$0xff]  ;;  %v1254_v30 = vld [vmem:[%s3301_s6] ss:$0 sm:$0xff] }
 0x1de   :  { %1809 = vmatprep.subr.bf16.mxu1 %v1808_v41  ;;  %1841 = vmatprep.subr.bf16.mxu0 %v1840_v42  ;;  %v819_v41 = vld [vmem:[%s3298_s5 + $0x278] sm:$0xff]  ;;  %v850_v42 = vld [vmem:[%s3298_s5 + $0x370] sm:$0xff] }
 0x1df   :  { %v1830_v44 = vpack.c.bf16 %v819_v41, %v818_v38  ;;  %v1862_v45 = vpack.c.bf16 %v851_v43, %v850_v42 }
 0x1e1   :  { %1811 = vmatpush3.bf16.msra.mxu1 %v1810_v49  ;;  %1843 = vmatpush3.bf16.msra.mxu0 %v1842_v20  ;;  %v438_v49 = vsub.s32 7, %v2440_v60  ;;  %v427_v20 = vrot.slane %v3037_v62, %v426_v46 }
 0x1e2   :  { %1813 = vmatprep.subr.bf16.mxu1 %v1812_v52  ;;  %1845 = vmatprep.subr.bf16.mxu0 %v1844_v53 }
 0x1e3   :  { %v439_v52 = vrot.slane %v3037_v62, %v438_v49  ;;  %v1156_v62 = vld [vmem:[%s3300_s7] sm:$0xff] }
 0x1e5   :  { %1815 = vmatpush3.bf16.msra.mxu1 %v1814_v0  ;;  %1847 = vmatpush3.bf16.msra.mxu0 %v1846_v1 }
 0x1e6   :  { %1817 = vmatprep.subr.bf16.mxu1 %v1816_v5  ;;  %1849 = vmatprep.subr.bf16.mxu0 %v1848_v6  ;;  %v1892_v5 = vmov 0.0|0.0   ;;  %v1157_v6 = vld [vmem:[%s3300_s7 + $0x8] sm:$0xff] }
 0x1e7   :  { %v1865_v8 = vpack.c.bf16 %v1157_v6, %v1156_v62 }
 0x1e9   :  { %1819 = vmatpush3.bf16.msra.mxu1 %v1818_v12  ;;  %1851 = vmatpush3.bf16.msra.mxu0 %v1850_v63  ;;  %v1871_v12 = vpack.c.bf16 %v1161_v11, %v1160_v61  ;;  %v1162_v63 = vld [vmem:[%s3300_s7 + $0x30] sm:$0xff] }
 0x1ea   :  { %1821 = vmatprep.subr.bf16.mxu1 %v1820_v15  ;;  %1853 = vmatprep.subr.bf16.mxu0 %v1852_v16  ;;  %v1874_v14 = vpack.c.bf16 %v1163_v13, %v1162_v63  ;;  %v1164_v15 = vld [vmem:[%s3300_s7 + $0x40] sm:$0xff]  ;;  %v1165_v16 = vld [vmem:[%s3300_s7 + $0x48] sm:$0xff] }
 0x1eb   :  { %v1877_v17 = vpack.c.bf16 %v1165_v16, %v1164_v15 }
 0x1ed   :  { %1823 = vmatpush3.bf16.msra.mxu1 %v1822_v24  ;;  %1855 = vmatpush3.bf16.msra.mxu0 %v1854_v25  ;;  %v1883_v24 = vpack.c.bf16 %v1169_v23, %v1168_v22  ;;  %v1170_v25 = vld [vmem:[%s3300_s7 + $0x70] sm:$0xff] }
 0x1ee   :  { %1825 = vmatprep.subr.bf16.mxu1 %v1824_v28  ;;  %1857 = vmatprep.subr.bf16.mxu0 %v1856_v29  ;;  %v1886_v27 = vpack.c.bf16 %v1171_v26, %v1170_v25 }
 0x1f1   :  { %1827 = vmatpush3.bf16.msra.mxu1 %v1826_v36  ;;  %1859 = vmatpush3.bf16.msra.mxu0 %v1858_v37 }
 0x1f2   :  { %1829 = vmatprep.subr.bf16.mxu1 %v1828_v39  ;;  %1861 = vmatprep.subr.bf16.mxu0 %v1860_v40 }
 0x1f5   :  { %1831 = vmatpush3.bf16.msra.mxu1 %v1830_v44  ;;  %1863 = vmatpush3.bf16.msra.mxu0 %v1862_v45  ;;  %v1255_v45 = vld [vmem:[%s3302_s8] ss:$0 sm:$0xff] }
 0x1f6   :  { %1864 = vmatprep.subr.bf16.mxu1 %v1892_v5 }
 0x211   :  { %v656_v53 = vpop.f32.mrb[2].mxu1  ;;  %v727_v54 = vpop.f32.mrb[4].mxu0 }
 0x212   :  { %v657_v55 = vadd.f32 %v656_v53, %v427_v20  ;;  %v728_v56 = vadd.f32 %v727_v54, %v435_v50  ;;  %v658_v57 = vpop.f32.mrb[3].mxu1  ;;  %v729_v58 = vpop.f32.mrb[5].mxu0 }
 0x213   :  { %v659_v59 = vadd.f32 %v658_v57, %v431_v51  ;;  %v730_v0 = vadd.f32 %v729_v58, %v439_v52 }
 0x214   :  { %v736_v4 = vmax.f32 %v657_v55, 0.0  ;;  %v738_v60 = vmax.f32 %v728_v56, 0.0 }
 0x215   :  { %v737_v1 = vmax.f32 %v659_v59, 0.0  ;;  %v739_v2 = vmax.f32 %v730_v0, 0.0 }
 0x217   :  { %1079 = vmatprep.mubr.f32.mxu1 %v737_v1  ;;  %1149 = vmatprep.mubr.f32.mxu0 %v739_v2 }
 0x218   :  { %1080 = vmatmul.mubr.f32.vlgmr.msra.gmra.mrb[6].mxu1 %v736_v4  ;;  %1150 = vmatmul.mubr.f32.vlgmr.msra.gmra.mrb[8].mxu0 %v738_v60 }
 0x219   :  { %1866 = vmatpush3.bf16.msra.mxu1 %v1865_v8  ;;  %1445 = vmatprep.mubr.msk.f32.mxu1 %vm1893_vm0, %v1891_v3 }
 0x21a   :  { %1867 = vmatprep.subr.bf16.mxu1 %v1892_v5 }
 0x21d   :  { %1869 = vmatpush3.bf16.msra.mxu1 %v1868_v10 }
 0x21e   :  { %1870 = vmatprep.subr.bf16.mxu1 %v1892_v5 }
 0x221   :  { %1872 = vmatpush3.bf16.msra.mxu1 %v1871_v12 }
 0x222   :  { %1873 = vmatprep.subr.bf16.mxu1 %v1892_v5 }
 0x225   :  { %1875 = vmatpush3.bf16.msra.mxu1 %v1874_v14 }
 0x226   :  { %1876 = vmatprep.subr.bf16.mxu1 %v1892_v5 }
 0x229   :  { %1878 = vmatpush3.bf16.msra.mxu1 %v1877_v17 }
 0x22a   :  { %1879 = vmatprep.subr.bf16.mxu1 %v1892_v5 }
 0x22d   :  { %1881 = vmatpush3.bf16.msra.mxu1 %v1880_v21 }
 0x22e   :  { %1882 = vmatprep.subr.bf16.mxu1 %v1892_v5 }
 0x231   :  { %1884 = vmatpush3.bf16.msra.mxu1 %v1883_v24 }
 0x232   :  { %1885 = vmatprep.subr.bf16.mxu1 %v1892_v5 }
 0x235   :  { %1887 = vmatpush3.bf16.msra.mxu1 %v1886_v27 }
 0x2ab   :  { %v1288_v28 = vpop.f32.mrb[4].mxu1  ;;  %v1323_v29 = vpop.f32.mrb[6].mxu0 }
 0x2ac   :  { %v1289_v31 = vpop.f32.mrb[5].mxu1  ;;  %v1324_v32 = vpop.f32.mrb[7].mxu0 }
 0x2ad   :  { %v1290_v33 = vadd.f32 %v1289_v31, %v1288_v28  ;;  %v1325_v34 = vadd.f32 %v1324_v32, %v1323_v29 }
 0x2af   :  { %v942_v35 = vadd.f32 %v1290_v33, %v1254_v30 }
 0x2b1   :  { %v1012_v36 = vadd.f32 %v1325_v34, %v942_v35 }
 0x2eb   :  { %v1358_v37 = vpop.f32.mrb[6].mxu1  ;;  %v1393_v38 = vpop.f32.mrb[8].mxu0 }
 0x2ec   :  { %v1359_v39 = vpop.f32.mrb[7].mxu1  ;;  %v1394_v40 = vpop.f32.mrb[9].mxu0 }
 0x2ed   :  { %v1360_v41 = vadd.f32 %v1359_v39, %v1358_v37  ;;  %v1395_v42 = vadd.f32 %v1394_v40, %v1393_v38 }
 0x2ef   :  { %v1082_v43 = vadd.f32 %v1360_v41, %v1012_v36 }
 0x2f1   :  { %v1152_v3 = vadd.f32 %v1395_v42, %v1082_v43 }
 0x2f3   :  { %v1155_v44 = vmax.f32 %v1152_v3, 0.0 }
 0x2f5   :  { %1446 = vmatmul.mubr.f32.vlgmr.msra.gmra.mrb[8].mxu1 %v1155_v44 }
 0x3c8   :  { %v1245_v46 = vpop.f32.mrb[8].mxu1 }
 0x3c9   :  { %v1246_v47 = vadd.f32 %v1255_v45, %v1245_v46  ;;  %v1447_v48 = vpop.f32.mrb[9].mxu1 }
 0x3cb   :  { %1249 = vst [vmem:[%s3303_s9] sm:$0xff] %v1246_v47 }

</bundles_post_ra>
